<compile_context>
chip_gen: v5e
topology: v5e:2x2
jax: 0.10.0
libtpu: 0.0.40
codegen_flags: <defaults>
</compile_context>

<pallas_src>
import functools

import jax
import jax.numpy as jnp
from jax.experimental import pallas as pl
from jax.experimental.pallas import tpu as pltpu


def _round_up(x, m):
    return (x + m - 1) // m * m


# ----------------------------------------------------------------------------
# Pallas kernel: out = act((X @ W) * scale + bias) [+ residual]
# ----------------------------------------------------------------------------

def _matmul_bn_act_kernel(x_ref, w_ref, s_ref, b_ref, *rest,
                          nk, act, fuse_residual):
    if fuse_residual:
        res_ref, o_ref, acc_ref = rest
    else:
        o_ref, acc_ref = rest

    @pl.when(pl.program_id(2) == 0)
    def _():
        acc_ref[...] = jnp.zeros_like(acc_ref)

    # bf16 x bf16 -> f32 accumulation on the MXU.
    acc_ref[...] += jnp.dot(x_ref[...], w_ref[...],
                            preferred_element_type=jnp.float32)

    @pl.when(pl.program_id(2) == nk - 1)
    def _():
        y = acc_ref[...] * s_ref[...] + b_ref[...]          # folded BN (f32)
        if act == "leaky":
            y = jnp.where(y > 0, y, 0.1 * y)                # LeakyReLU(0.1)
        elif act == "relu":
            y = jnp.maximum(y, 0.0)
        if fuse_residual:
            y = y + res_ref[...].astype(jnp.float32)        # fused skip add
        o_ref[...] = y.astype(o_ref.dtype)


def _k_tiling(K):
    """K padding / tile choice: single un-padded step for small K, else 128-pad."""
    if K % 8 == 0 and K <= 1024:
        return K, K                      # Kp, tk  (single reduction step)
    Kp = _round_up(K, 128)
    tk = next(c for c in (512, 256, 128) if Kp % c == 0)
    return Kp, tk


def matmul_bn_act(x, prm, *, act, residual=None, out_dtype=jnp.float32):
    """x: (M, K).  prm holds the pre-padded bf16 weight (Kp, Np), f32 scale/bias
    (1, Np) and the tiling metadata.  Returns (M, cout)."""
    M, K = x.shape
    Kp, Np, tk, tn, N = prm["Kp"], prm["Np"], prm["tk"], prm["tn"], prm["cout"]

    tm = min(256, _round_up(M, 16))
    Mp = _round_up(M, tm)
    nk = Kp // tk

    xp = x.astype(jnp.bfloat16)
    if (Mp, Kp) != (M, K):
        xp = jnp.pad(xp, ((0, Mp - M), (0, Kp - K)))

    inputs = [xp, prm["w"], prm["scale"], prm["bias"]]
    in_specs = [
        pl.BlockSpec((tm, tk), lambda i, j, k: (i, k)),
        pl.BlockSpec((tk, tn), lambda i, j, k: (k, j)),
        pl.BlockSpec((1, tn), lambda i, j, k: (0, j)),
        pl.BlockSpec((1, tn), lambda i, j, k: (0, j)),
    ]

    fuse_residual = residual is not None
    if fuse_residual:
        rp = residual.astype(jnp.float32)
        if rp.shape != (Mp, Np):
            rp = jnp.pad(rp, ((0, Mp - rp.shape[0]), (0, Np - rp.shape[1])))
        inputs.append(rp)
        in_specs.append(pl.BlockSpec((tm, tn), lambda i, j, k: (i, j)))

    out = pl.pallas_call(
        functools.partial(_matmul_bn_act_kernel, nk=nk, act=act,
                          fuse_residual=fuse_residual),
        out_shape=jax.ShapeDtypeStruct((Mp, Np), out_dtype),
        grid_spec=pltpu.PrefetchScalarGridSpec(
            num_scalar_prefetch=0,
            grid=(Mp // tm, Np // tn, nk),
            in_specs=in_specs,
            out_specs=pl.BlockSpec((tm, tn), lambda i, j, k: (i, j)),
            scratch_shapes=[pltpu.VMEM((tm, tn), jnp.float32)],
        ),
        compiler_params=pltpu.CompilerParams(
            dimension_semantics=("parallel", "parallel", "arbitrary")),
    )(*inputs)
    return out[:M, :N]


# ----------------------------------------------------------------------------
# Conv + BN + LeakyReLU wrapper (im2col glue + fused Pallas matmul)
# ----------------------------------------------------------------------------

def conv_bn_act(x_nhwc, prm, *, act="leaky", residual=None,
                out_dtype=jnp.float32):
    k, s, p = prm["k"], prm["s"], prm["p"]
    N, H, W, C = x_nhwc.shape
    OH = (H + 2 * p - k) // s + 1
    OW = (W + 2 * p - k) // s + 1

    xb = x_nhwc.astype(jnp.bfloat16)           # bf16 activations into the MXU
    if k == 1 and s == 1 and p == 0:
        xc = xb.reshape(N * H * W, C)          # 1x1 conv == plain matmul
    else:
        # TODO(synk): replace the HBM-materialized im2col with windowed DMA
        # (halo'd row slabs via manual make_async_copy) for large feature maps.
        xpd = jnp.pad(xb, ((0, 0), (p, p), (p, p), (0, 0)))
        cols = []
        for kh in range(k):
            for kw in range(k):
                cols.append(xpd[:, kh: kh + s * (OH - 1) + 1: s,
                                kw: kw + s * (OW - 1) + 1: s, :])
        xc = jnp.concatenate(cols, axis=-1).reshape(N * OH * OW, k * k * C)

    res2d = None
    if residual is not None:
        res2d = residual.reshape(N * OH * OW, -1)

    y = matmul_bn_act(xc, prm, act=act, residual=res2d, out_dtype=out_dtype)
    return y.reshape(N, OH, OW, prm["cout"])


# ----------------------------------------------------------------------------
# Deterministic parameter construction (synthetic weights, BN folded, pre-padded)
# ----------------------------------------------------------------------------

def _init_conv_params(key, cin, cout, k, s, p, conv_bias=True):
    kw_, kb_, kg_, kbt_ = jax.random.split(key, 4)
    fan_in = cin * k * k
    # torch layout (cout, cin, kh, kw) -> im2col layout (kh*kw*cin, cout)
    w = jax.random.normal(kw_, (cout, cin, k, k), jnp.float32) * jnp.sqrt(2.0 / fan_in)
    w2 = jnp.transpose(w, (2, 3, 1, 0)).reshape(k * k * cin, cout)
    b = (0.01 * jax.random.normal(kb_, (cout,), jnp.float32)
         if conv_bias else jnp.zeros((cout,), jnp.float32))
    gamma = 1.0 + 0.05 * jax.random.normal(kg_, (cout,), jnp.float32)
    beta = 0.01 * jax.random.normal(kbt_, (cout,), jnp.float32)
    mean = jnp.zeros((cout,), jnp.float32)      # BN eval-mode running stats
    var = jnp.ones((cout,), jnp.float32)
    eps = 1e-5
    scale = gamma / jnp.sqrt(var + eps)
    bias = beta + scale * (b - mean)            # conv bias folded into BN bias

    K, N = k * k * cin, cout
    tn = 256 if N >= 256 else 128               # 256-wide N tile for v6e/v7x MXU
    Np = _round_up(N, tn)
    Kp, tk = _k_tiling(K)

    # Pre-pad / pre-cast once (no per-call pad copies, lane-dense weight DMA).
    wp = jnp.pad(w2, ((0, Kp - K), (0, Np - N))).astype(jnp.bfloat16)
    sp = jnp.pad(scale, (0, Np - N)).reshape(1, Np)
    bp = jnp.pad(bias, (0, Np - N)).reshape(1, Np)
    return {"w": wp, "scale": sp, "bias": bp, "k": k, "s": s, "p": p,
            "cin": cin, "cout": cout, "Kp": Kp, "Np": Np, "tk": tk, "tn": tn}


def build_conv_residual_params(key, c_in):
    c = c_in // 2
    k1, k2 = jax.random.split(key)
    return {
        "conv1": _init_conv_params(k1, c_in, c, 1, 1, 0),   # Conv(c_in, c, 1,1,0)
        "conv2": _init_conv_params(k2, c, c_in, 3, 1, 1),   # Conv(c, c_in, 3,1,1)
    }


# ----------------------------------------------------------------------------
# ConvResidual forward (mirrors the PyTorch module)
# ----------------------------------------------------------------------------

def conv_residual_forward(params, x_nchw):
    x = jnp.transpose(x_nchw, (0, 2, 3, 1)).astype(jnp.float32)  # NCHW -> NHWC
    # Conv(c_in, c, 1,1,0) + BN + LeakyReLU; intermediate kept in bf16 so the
    # following 3x3 im2col buffer carries half the HBM traffic.
    h = conv_bn_act(x, params["conv1"], act="leaky", out_dtype=jnp.bfloat16)
    # Conv(c, c_in, 3,1,1) + BN + LeakyReLU with the residual add fused into
    # the matmul epilogue (entry + conv(entry)), f32 output.
    y = conv_bn_act(h, params["conv2"], act="leaky", residual=x,
                    out_dtype=jnp.float32)
    return jnp.transpose(y, (0, 3, 1, 2))                        # NHWC -> NCHW


# ----------------------------------------------------------------------------
# main
# ----------------------------------------------------------------------------

if __name__ == "__main__":
    key = jax.random.PRNGKey(0)
    k_param, k_in = jax.random.split(key)

    B, C_IN, H, W = 2, 64, 16, 16
    params = build_conv_residual_params(k_param, C_IN)
    x = jax.random.normal(k_in, (B, C_IN, H, W), jnp.float32)

    fwd = jax.jit(lambda inp: conv_residual_forward(params, inp))
    out = jax.block_until_ready(fwd(x))

    assert out.shape == (B, C_IN, H, W), out.shape
    assert out.dtype == jnp.float32
    assert bool(jnp.all(jnp.isfinite(out)))
    print("KERNEL_OK")
</pallas_src>

<mosaic_0001>
module attributes {stable_mosaic.version = 11 : i64} {
  func.func @_matmul_bn_act_kernel(%arg0: i32, %arg1: i32, %arg2: i32, %arg3: memref<256x64xbf16, #tpu.memory_space<vmem>>, %arg4: memref<64x128xbf16, #tpu.memory_space<vmem>>, %arg5: memref<1x128xf32, #tpu.memory_space<vmem>>, %arg6: memref<1x128xf32, #tpu.memory_space<vmem>>, %arg7: memref<256x128xbf16, #tpu.memory_space<vmem>>, %arg8: memref<256x128xf32, #tpu.memory_space<vmem>>) attributes {dimension_semantics = [#tpu.dimension_semantics<parallel>, #tpu.dimension_semantics<parallel>, #tpu.dimension_semantics<arbitrary>], iteration_bounds = array<i64: 2, 1, 1>, scalar_prefetch = 0 : i64, scratch_operands = 1 : i64, tpu.core_type = #tpu.core_type<tc>, window_params = [{transform_indices = @transform_0, window_bounds = array<i64: 256, 64>}, {transform_indices = @transform_1, window_bounds = array<i64: 64, 128>}, {transform_indices = @transform_2, window_bounds = array<i64: 1, 128>}, {transform_indices = @transform_3, window_bounds = array<i64: 1, 128>}, {transform_indices = @transform_4, window_bounds = array<i64: 256, 128>}]} {
    %c0_i32 = arith.constant 0 : i32
    %0 = arith.cmpi eq, %arg2, %c0_i32 : i32
    %1 = arith.extui %0 : i1 to i32
    %c0_i32_0 = arith.constant 0 : i32
    %2 = arith.cmpi ne, %1, %c0_i32_0 : i32
    scf.if %2 {
      %cst_10 = arith.constant 0.000000e+00 : f32
      %12 = vector.broadcast %cst_10 : f32 to vector<256x128xf32>
      %c0_11 = arith.constant 0 : index
      %c0_12 = arith.constant 0 : index
      %13 = vector.load %arg8[%c0_11, %c0_12] : memref<256x128xf32, #tpu.memory_space<vmem>>, vector<256x128xf32>
      tpu.vector_store %arg8[%c0_11, %c0_12], %12 {strides = array<i32>} : memref<256x128xf32, #tpu.memory_space<vmem>>, vector<256x128xf32>,
    } else {
    }
    %c0 = arith.constant 0 : index
    %c0_1 = arith.constant 0 : index
    %3 = vector.load %arg8[%c0, %c0_1] : memref<256x128xf32, #tpu.memory_space<vmem>>, vector<256x128xf32>
    %c0_2 = arith.constant 0 : index
    %c0_3 = arith.constant 0 : index
    %4 = vector.load %arg3[%c0_2, %c0_3] : memref<256x64xbf16, #tpu.memory_space<vmem>>, vector<256x64xbf16>
    %c0_4 = arith.constant 0 : index
    %c0_5 = arith.constant 0 : index
    %5 = vector.load %arg4[%c0_4, %c0_5] : memref<64x128xbf16, #tpu.memory_space<vmem>>, vector<64x128xbf16>
    %cst = arith.constant dense<0.000000e+00> : vector<256x128xf32>
    %6 = tpu.matmul %4, %5, %cst {dimension_numbers = #tpu.dot_dimension_numbers<[1], [0], [0], [1], [0, 0, 1, 1], [], []>} : vector<256x64xbf16>, vector<64x128xbf16>, vector<256x128xf32> -> vector<256x128xf32>
    %7 = arith.addf %3, %6 : vector<256x128xf32>
    %c0_6 = arith.constant 0 : index
    %c0_7 = arith.constant 0 : index
    %8 = vector.load %arg8[%c0_6, %c0_7] : memref<256x128xf32, #tpu.memory_space<vmem>>, vector<256x128xf32>
    tpu.vector_store %arg8[%c0_6, %c0_7], %7 {strides = array<i32>} : memref<256x128xf32, #tpu.memory_space<vmem>>, vector<256x128xf32>,
    %c0_i32_8 = arith.constant 0 : i32
    %9 = arith.cmpi eq, %arg2, %c0_i32_8 : i32
    %10 = arith.extui %9 : i1 to i32
    %c0_i32_9 = arith.constant 0 : i32
    %11 = arith.cmpi ne, %10, %c0_i32_9 : i32
    scf.if %11 {
      %c0_10 = arith.constant 0 : index
      %c0_11 = arith.constant 0 : index
      %12 = vector.load %arg8[%c0_10, %c0_11] : memref<256x128xf32, #tpu.memory_space<vmem>>, vector<256x128xf32>
      %c0_12 = arith.constant 0 : index
      %c0_13 = arith.constant 0 : index
      %13 = vector.load %arg5[%c0_12, %c0_13] : memref<1x128xf32, #tpu.memory_space<vmem>>, vector<1x128xf32>
      %14 = vector.broadcast %13 : vector<1x128xf32> to vector<256x128xf32>
      %15 = arith.mulf %12, %14 : vector<256x128xf32>
      %c0_14 = arith.constant 0 : index
      %c0_15 = arith.constant 0 : index
      %16 = vector.load %arg6[%c0_14, %c0_15] : memref<1x128xf32, #tpu.memory_space<vmem>>, vector<1x128xf32>
      %17 = vector.broadcast %16 : vector<1x128xf32> to vector<256x128xf32>
      %18 = arith.addf %15, %17 : vector<256x128xf32>
      %cst_16 = arith.constant 0.000000e+00 : f32
      %19 = vector.broadcast %cst_16 : f32 to vector<256x128xf32>
      %20 = arith.cmpf ogt, %18, %19 : vector<256x128xf32>
      %cst_17 = arith.constant 1.000000e-01 : f32
      %21 = vector.broadcast %cst_17 : f32 to vector<256x128xf32>
      %22 = arith.mulf %21, %18 : vector<256x128xf32>
      %23 = arith.select %20, %18, %22 : vector<256x128xi1>, vector<256x128xf32>
      %24 = arith.truncf %23 : vector<256x128xf32> to vector<256x128xbf16>
      %c0_18 = arith.constant 0 : index
      %c0_19 = arith.constant 0 : index
      %25 = vector.load %arg7[%c0_18, %c0_19] : memref<256x128xbf16, #tpu.memory_space<vmem>>, vector<256x128xbf16>
      tpu.vector_store %arg7[%c0_18, %c0_19], %24 {strides = array<i32>} : memref<256x128xbf16, #tpu.memory_space<vmem>>, vector<256x128xbf16>,
    } else {
    }
    return
  }
  func.func @transform_0(%arg0: i32, %arg1: i32, %arg2: i32) -> (i32, i32) {
    %c0_i32 = arith.constant 0 : i32
    return %arg0, %arg2 : i32, i32
  }
  func.func @transform_1(%arg0: i32, %arg1: i32, %arg2: i32) -> (i32, i32) {
    %c0_i32 = arith.constant 0 : i32
    return %arg2, %arg1 : i32, i32
  }
  func.func @transform_2(%arg0: i32, %arg1: i32, %arg2: i32) -> (i32, i32) {
    %c0_i32 = arith.constant 0 : i32
    %c0_i32_0 = arith.constant 0 : i32
    return %c0_i32, %arg1 : i32, i32
  }
  func.func @transform_3(%arg0: i32, %arg1: i32, %arg2: i32) -> (i32, i32) {
    %c0_i32 = arith.constant 0 : i32
    %c0_i32_0 = arith.constant 0 : i32
    return %c0_i32, %arg1 : i32, i32
  }
  func.func @transform_4(%arg0: i32, %arg1: i32, %arg2: i32) -> (i32, i32) {
    %c0_i32 = arith.constant 0 : i32
    return %arg0, %arg1 : i32, i32
  }
}

module attributes {stable_mosaic.version = 11 : i64} {
  func.func @_matmul_bn_act_kernel(%arg0: i32, %arg1: i32, %arg2: i32, %arg3: memref<256x288xbf16, #tpu.memory_space<vmem>>, %arg4: memref<288x128xbf16, #tpu.memory_space<vmem>>, %arg5: memref<1x128xf32, #tpu.memory_space<vmem>>, %arg6: memref<1x128xf32, #tpu.memory_space<vmem>>, %arg7: memref<256x128xf32, #tpu.memory_space<vmem>>, %arg8: memref<256x128xf32, #tpu.memory_space<vmem>>, %arg9: memref<256x128xf32, #tpu.memory_space<vmem>>) attributes {dimension_semantics = [#tpu.dimension_semantics<parallel>, #tpu.dimension_semantics<parallel>, #tpu.dimension_semantics<arbitrary>], iteration_bounds = array<i64: 2, 1, 1>, scalar_prefetch = 0 : i64, scratch_operands = 1 : i64, tpu.core_type = #tpu.core_type<tc>, window_params = [{transform_indices = @transform_0, window_bounds = array<i64: 256, 288>}, {transform_indices = @transform_1, window_bounds = array<i64: 288, 128>}, {transform_indices = @transform_2, window_bounds = array<i64: 1, 128>}, {transform_indices = @transform_3, window_bounds = array<i64: 1, 128>}, {transform_indices = @transform_4, window_bounds = array<i64: 256, 128>}, {transform_indices = @transform_5, window_bounds = array<i64: 256, 128>}]} {
    %c0_i32 = arith.constant 0 : i32
    %0 = arith.cmpi eq, %arg2, %c0_i32 : i32
    %1 = arith.extui %0 : i1 to i32
    %c0_i32_0 = arith.constant 0 : i32
    %2 = arith.cmpi ne, %1, %c0_i32_0 : i32
    scf.if %2 {
      %cst_10 = arith.constant 0.000000e+00 : f32
      %12 = vector.broadcast %cst_10 : f32 to vector<256x128xf32>
      %c0_11 = arith.constant 0 : index
      %c0_12 = arith.constant 0 : index
      %13 = vector.load %arg9[%c0_11, %c0_12] : memref<256x128xf32, #tpu.memory_space<vmem>>, vector<256x128xf32>
      tpu.vector_store %arg9[%c0_11, %c0_12], %12 {strides = array<i32>} : memref<256x128xf32, #tpu.memory_space<vmem>>, vector<256x128xf32>,
    } else {
    }
    %c0 = arith.constant 0 : index
    %c0_1 = arith.constant 0 : index
    %3 = vector.load %arg9[%c0, %c0_1] : memref<256x128xf32, #tpu.memory_space<vmem>>, vector<256x128xf32>
    %c0_2 = arith.constant 0 : index
    %c0_3 = arith.constant 0 : index
    %4 = vector.load %arg3[%c0_2, %c0_3] : memref<256x288xbf16, #tpu.memory_space<vmem>>, vector<256x288xbf16>
    %c0_4 = arith.constant 0 : index
    %c0_5 = arith.constant 0 : index
    %5 = vector.load %arg4[%c0_4, %c0_5] : memref<288x128xbf16, #tpu.memory_space<vmem>>, vector<288x128xbf16>
    %cst = arith.constant dense<0.000000e+00> : vector<256x128xf32>
    %6 = tpu.matmul %4, %5, %cst {dimension_numbers = #tpu.dot_dimension_numbers<[1], [0], [0], [1], [0, 0, 1, 1], [], []>} : vector<256x288xbf16>, vector<288x128xbf16>, vector<256x128xf32> -> vector<256x128xf32>
    %7 = arith.addf %3, %6 : vector<256x128xf32>
    %c0_6 = arith.constant 0 : index
    %c0_7 = arith.constant 0 : index
    %8 = vector.load %arg9[%c0_6, %c0_7] : memref<256x128xf32, #tpu.memory_space<vmem>>, vector<256x128xf32>
    tpu.vector_store %arg9[%c0_6, %c0_7], %7 {strides = array<i32>} : memref<256x128xf32, #tpu.memory_space<vmem>>, vector<256x128xf32>,
    %c0_i32_8 = arith.constant 0 : i32
    %9 = arith.cmpi eq, %arg2, %c0_i32_8 : i32
    %10 = arith.extui %9 : i1 to i32
    %c0_i32_9 = arith.constant 0 : i32
    %11 = arith.cmpi ne, %10, %c0_i32_9 : i32
    scf.if %11 {
      %c0_10 = arith.constant 0 : index
      %c0_11 = arith.constant 0 : index
      %12 = vector.load %arg9[%c0_10, %c0_11] : memref<256x128xf32, #tpu.memory_space<vmem>>, vector<256x128xf32>
      %c0_12 = arith.constant 0 : index
      %c0_13 = arith.constant 0 : index
      %13 = vector.load %arg5[%c0_12, %c0_13] : memref<1x128xf32, #tpu.memory_space<vmem>>, vector<1x128xf32>
      %14 = vector.broadcast %13 : vector<1x128xf32> to vector<256x128xf32>
      %15 = arith.mulf %12, %14 : vector<256x128xf32>
      %c0_14 = arith.constant 0 : index
      %c0_15 = arith.constant 0 : index
      %16 = vector.load %arg6[%c0_14, %c0_15] : memref<1x128xf32, #tpu.memory_space<vmem>>, vector<1x128xf32>
      %17 = vector.broadcast %16 : vector<1x128xf32> to vector<256x128xf32>
      %18 = arith.addf %15, %17 : vector<256x128xf32>
      %cst_16 = arith.constant 0.000000e+00 : f32
      %19 = vector.broadcast %cst_16 : f32 to vector<256x128xf32>
      %20 = arith.cmpf ogt, %18, %19 : vector<256x128xf32>
      %cst_17 = arith.constant 1.000000e-01 : f32
      %21 = vector.broadcast %cst_17 : f32 to vector<256x128xf32>
      %22 = arith.mulf %21, %18 : vector<256x128xf32>
      %23 = arith.select %20, %18, %22 : vector<256x128xi1>, vector<256x128xf32>
      %c0_18 = arith.constant 0 : index
      %c0_19 = arith.constant 0 : index
      %24 = vector.load %arg7[%c0_18, %c0_19] : memref<256x128xf32, #tpu.memory_space<vmem>>, vector<256x128xf32>
      %25 = arith.addf %23, %24 : vector<256x128xf32>
      %c0_20 = arith.constant 0 : index
      %c0_21 = arith.constant 0 : index
      %26 = vector.load %arg8[%c0_20, %c0_21] : memref<256x128xf32, #tpu.memory_space<vmem>>, vector<256x128xf32>
      tpu.vector_store %arg8[%c0_20, %c0_21], %25 {strides = array<i32>} : memref<256x128xf32, #tpu.memory_space<vmem>>, vector<256x128xf32>,
    } else {
    }
    return
  }
  func.func @transform_0(%arg0: i32, %arg1: i32, %arg2: i32) -> (i32, i32) {
    %c0_i32 = arith.constant 0 : i32
    return %arg0, %arg2 : i32, i32
  }
  func.func @transform_1(%arg0: i32, %arg1: i32, %arg2: i32) -> (i32, i32) {
    %c0_i32 = arith.constant 0 : i32
    return %arg2, %arg1 : i32, i32
  }
  func.func @transform_2(%arg0: i32, %arg1: i32, %arg2: i32) -> (i32, i32) {
    %c0_i32 = arith.constant 0 : i32
    %c0_i32_0 = arith.constant 0 : i32
    return %c0_i32, %arg1 : i32, i32
  }
  func.func @transform_3(%arg0: i32, %arg1: i32, %arg2: i32) -> (i32, i32) {
    %c0_i32 = arith.constant 0 : i32
    %c0_i32_0 = arith.constant 0 : i32
    return %c0_i32, %arg1 : i32, i32
  }
  func.func @transform_4(%arg0: i32, %arg1: i32, %arg2: i32) -> (i32, i32) {
    %c0_i32 = arith.constant 0 : i32
    return %arg0, %arg1 : i32, i32
  }
  func.func @transform_5(%arg0: i32, %arg1: i32, %arg2: i32) -> (i32, i32) {
    %c0_i32 = arith.constant 0 : i32
    return %arg0, %arg1 : i32, i32
  }
}

</mosaic_0001>

<bundles_post_ra>
// kernel: _lambda_.2
= control target key start
LH: loop header
LB: loop body
LE: loop exit
PB: predicated region body
PF: predicated region fallthrough
CT: control target
= control target key end

     0   :  { %s1417_s15 = smov 0   ;;  %s1419_s16 = smov 0   ;;  %s1595_s0 = inlined_call_operand.vmem [shape: bf16[512,64], index: 0, kind: input, shape index: {}]   ;;  %s1596_s1 = inlined_call_operand.vmem [shape: bf16[64,128], index: 1, kind: input, shape index: {}]   ;;  %s1597_s2 = inlined_call_operand.vmem [shape: f32[1,128], index: 2, kind: input, shape index: {}]   ;;  %s1598_s3 = inlined_call_operand.vmem [shape: f32[1,128], index: 3, kind: input, shape index: {}]   ;;  %s1599_s4 = inlined_call_operand.vmem [shape: bf16[512,128], index: 4, kind: output, shape index: {}]  }
   0x1   :  { %s1421_s17 = smov 0  }
   0x2 LB: > { %s33_s18 = sadd.s32 1, %s1386_s16  ;;  %p1112_p0 = scmp.ge.s32.totalorder %s1390_s17, 1  ;;  %s1390_s17 = sphi %s1421_s17, %s14_s17   ;;  %s1386_s16 = sphi %s1419_s16, %s1601_s16   ;;  %s1382_s15 = sphi %s1417_s15, %s1600_s15  }
   0x3   : > { %p35_p1 = scmp.ge.s32.totalorder %s33_s18, 2  ;;  %p221_p2 = scmp.lt.s32.totalorder %s1390_s17, 3 }
   0x5   : > { %s1603_s18 = smov (%p35_p1, %s33_s18), 0  ;;  %p222_p3 = pnand %p1112_p0, %p221_p2 }
   0x6   : > { %s1113_s21 = sshll.u32 (!%p222_p3), %s1382_s15, 5 }
   0x7   : > { %225 = sbr.rel (%p222_p3) target bundleno = 228 (0xe4), region = 36  ;;  %p268_p4 = scmp.lt.s32.totalorder (!%p222_p3), %s1113_s21, 63 }
   0xc   : > { %v1234_v0 = vld [vmem:[%s1596_s1 + $0x18] sm:$0xff]  ;;  %v1233_v1 = vld [vmem:[%s1596_s1 + $0x10] sm:$0xff]  ;;  %s1605_s21 = smov (!%p268_p4, %s1113_s21), 63  ;;  %v1232_v2 = vld [vmem:[%s1596_s1 + $0x8] sm:$0xff]  ;;  %vm513_vm0 = vcmask 523264  }
   0xd   : > { %566 = vmatpush.bf16.msra.mxu0 %v1234_v0  ;;  %1330 = vmatpush.bf16.msra.mxu1 %v1234_v0  ;;  %s1114_s26 = sshll.u32 %s1605_s21, 2  ;;  %v1231_v3 = vld [vmem:[%s1596_s1] sm:$0xff] }
   0xe   : > { %1331 = vmatpush.bf16.msra.mxu2 %v1234_v0  ;;  %1332 = vmatpush.bf16.msra.mxu3 %v1234_v0  ;;  %s1455_s5 = scalar_lea.vmem %s1595_s0, %s1114_s26  ;;  %v1492_v20 = vld [vmem:[%s1597_s2] ss:$0 sm:$0xff]  ;;  %s1516_s12 = scalar_lea.vmem %s1599_s4, %s1114_s26 }
   0xf   : > { %v1215_v4 = vld [vmem:[%s1455_s5] sm:$0xff]  ;;  %v1216_v8 = vld [vmem:[%s1455_s5 + $0x8] sm:$0xff]  ;;  %v1217_v12 = vld [vmem:[%s1455_s5 + $0x10] sm:$0xff] }
  0x10   : > { %v1219_v5 = vld [vmem:[%s1455_s5 + $0x20] sm:$0xff]  ;;  %v1220_v9 = vld [vmem:[%s1455_s5 + $0x28] sm:$0xff]  ;;  %v1221_v13 = vld [vmem:[%s1455_s5 + $0x30] sm:$0xff] }
  0x11   : > { %567 = vmatpush.bf16.msra.mxu0 %v1233_v1  ;;  %1333 = vmatpush.bf16.msra.mxu1 %v1233_v1  ;;  %v1223_v6 = vld [vmem:[%s1455_s5 + $0x40] sm:$0xff]  ;;  %v1224_v10 = vld [vmem:[%s1455_s5 + $0x48] sm:$0xff]  ;;  %v1225_v14 = vld [vmem:[%s1455_s5 + $0x50] sm:$0xff] }
  0x12   : > { %1334 = vmatpush.bf16.msra.mxu2 %v1233_v1  ;;  %1335 = vmatpush.bf16.msra.mxu3 %v1233_v1  ;;  %v1227_v7 = vld [vmem:[%s1455_s5 + $0x60] sm:$0xff]  ;;  %v1228_v11 = vld [vmem:[%s1455_s5 + $0x68] sm:$0xff]  ;;  %v1229_v15 = vld [vmem:[%s1455_s5 + $0x70] sm:$0xff] }
  0x13   : > { %v1218_v16 = vld [vmem:[%s1455_s5 + $0x18] sm:$0xff]  ;;  %v1498_v24 = vld [vmem:[%s1598_s3] ss:$0 sm:$0xff] }
  0x14   : > { %v1222_v17 = vld [vmem:[%s1455_s5 + $0x38] sm:$0xff] }
  0x15   : > { %568 = vmatpush.bf16.msra.mxu0 %v1232_v2  ;;  %1336 = vmatpush.bf16.msra.mxu1 %v1232_v2  ;;  %v1226_v18 = vld [vmem:[%s1455_s5 + $0x58] sm:$0xff] }
  0x16   : > { %1337 = vmatpush.bf16.msra.mxu2 %v1232_v2  ;;  %1338 = vmatpush.bf16.msra.mxu3 %v1232_v2  ;;  %v1230_v19 = vld [vmem:[%s1455_s5 + $0x78] sm:$0xff] }
  0x19   : > { %569 = vmatpush.bf16.msra.mxu0 %v1231_v3  ;;  %1339 = vmatpush.bf16.msra.mxu1 %v1231_v3 }
  0x1a   : > { %1340 = vmatpush.bf16.msra.mxu2 %v1231_v3  ;;  %1341 = vmatpush.bf16.msra.mxu3 %v1231_v3 }
  0x1c   : > { %1197 = vmatmul.msk.bf16.vlgmr.msra.gmra.mxu0 %vm513_vm0, %v1215_v4  ;;  %1201 = vmatmul.msk.bf16.vlgmr.msra.gmra.mxu1 %vm513_vm0, %v1219_v5 }
  0x1d   : > { %1205 = vmatmul.msk.bf16.vlgmr.msra.gmra.mxu2 %vm513_vm0, %v1223_v6  ;;  %1209 = vmatmul.msk.bf16.vlgmr.msra.gmra.mxu3 %vm513_vm0, %v1227_v7 }
  0x2c   : > { %1198 = vmatmul.msk.bf16.gmra.mxu0 %vm513_vm0, %v1216_v8  ;;  %1202 = vmatmul.msk.bf16.gmra.mxu1 %vm513_vm0, %v1220_v9 }
  0x2d   : > { %1206 = vmatmul.msk.bf16.gmra.mxu2 %vm513_vm0, %v1224_v10  ;;  %1210 = vmatmul.msk.bf16.gmra.mxu3 %vm513_vm0, %v1228_v11 }
  0x3c   : > { %1199 = vmatmul.msk.bf16.gmra.mxu0 %vm513_vm0, %v1217_v12  ;;  %1203 = vmatmul.msk.bf16.gmra.mxu1 %vm513_vm0, %v1221_v13 }
  0x3d   : > { %1207 = vmatmul.msk.bf16.gmra.mxu2 %vm513_vm0, %v1225_v14  ;;  %1211 = vmatmul.msk.bf16.gmra.mxu3 %vm513_vm0, %v1229_v15 }
  0x4c   : > { %1200 = vmatmul.msk.bf16.gmra.mxu0 %vm513_vm0, %v1218_v16  ;;  %1204 = vmatmul.msk.bf16.gmra.mxu1 %vm513_vm0, %v1222_v17 }
  0x4d   : > { %1208 = vmatmul.msk.bf16.gmra.mxu2 %vm513_vm0, %v1226_v18  ;;  %1212 = vmatmul.msk.bf16.gmra.mxu3 %vm513_vm0, %v1230_v19 }
  0x99   : > { %v571_v21 = vpop.f32.mrf.mxu0  ;;  %v591_v22 = vpop.f32.mrf.mxu1 }
  0x9a   : > { %v754_v23 = vmul.f32 %v1492_v20, %v571_v21  ;;  %v762_v25 = vmul.f32 %v1492_v20, %v591_v22 }
  0x9c   : > { %v790_v26 = vadd.f32 %v1498_v24, %v754_v23  ;;  %v798_v27 = vadd.f32 %v1498_v24, %v762_v25 }
  0x9e   : > { %v854_v36 = vmul.f32 0.1, %v790_v26  ;;  %v862_v37 = vmul.f32 0.1, %v798_v27  ;;  %vm822_vm1 = vcmp.gt.f32.partialorder %v790_v26, 0.0  ;;  %vm830_vm2 = vcmp.gt.f32.partialorder %v798_v27, 0.0 }
  0xa0   : > { %v611_v28 = vpop.f32.mrf.mxu2  ;;  %v631_v29 = vpop.f32.mrf.mxu3  ;;  %v886_v44 = vsel %vm822_vm1, %v790_v26, %v854_v36  ;;  %v894_v45 = vsel %vm830_vm2, %v798_v27, %v862_v37 }
  0xa1   : > { %v573_v30 = vpop.f32.mrf.mxu0  ;;  %v593_v31 = vpop.f32.mrf.mxu1  ;;  %v770_v34 = vmul.f32 %v1492_v20, %v611_v28  ;;  %v778_v35 = vmul.f32 %v1492_v20, %v631_v29 }
  0xa2   : > { %v755_v32 = vmul.f32 %v1492_v20, %v573_v30  ;;  %v763_v33 = vmul.f32 %v1492_v20, %v593_v31 }
  0xa3   : > { %v806_v42 = vadd.f32 %v1498_v24, %v770_v34  ;;  %v814_v43 = vadd.f32 %v1498_v24, %v778_v35 }
  0xa4   : > { %v791_v38 = vadd.f32 %v1498_v24, %v755_v32  ;;  %v799_v39 = vadd.f32 %v1498_v24, %v763_v33 }
  0xa5   : > { %v870_v56 = vmul.f32 0.1, %v806_v42  ;;  %v878_v57 = vmul.f32 0.1, %v814_v43  ;;  %vm838_vm5 = vcmp.gt.f32.partialorder %v806_v42, 0.0  ;;  %vm846_vm6 = vcmp.gt.f32.partialorder %v814_v43, 0.0 }
  0xa6   : > { %vm823_vm3 = vcmp.gt.f32.partialorder %v791_v38, 0.0  ;;  %v855_v40 = vmul.f32 0.1, %v791_v38  ;;  %vm831_vm4 = vcmp.gt.f32.partialorder %v799_v39, 0.0  ;;  %v863_v41 = vmul.f32 0.1, %v799_v39 }
  0xa7   : > { %v902_v0 = vsel %vm838_vm5, %v806_v42, %v870_v56  ;;  %v910_v1 = vsel %vm846_vm6, %v814_v43, %v878_v57 }
  0xa8   : > { %v887_v46 = vsel %vm823_vm3, %v791_v38, %v855_v40  ;;  %v895_v47 = vsel %vm831_vm4, %v799_v39, %v863_v41  ;;  %v613_v48 = vpop.f32.mrf.mxu2  ;;  %v633_v49 = vpop.f32.mrf.mxu3 }
  0xa9   : > { %v1238_v50 = vpack.c.bf16 %v887_v46, %v886_v44  ;;  %v1258_v51 = vpack.c.bf16 %v895_v47, %v894_v45  ;;  %v771_v52 = vmul.f32 %v1492_v20, %v613_v48  ;;  %v779_v53 = vmul.f32 %v1492_v20, %v633_v49  ;;  %v576_v54 = vpop.f32.mrf.mxu0  ;;  %v596_v55 = vpop.f32.mrf.mxu1 }
  0xaa   : > { %v756_v60 = vmul.f32 %v1492_v20, %v576_v54  ;;  %v764_v61 = vmul.f32 %v1492_v20, %v596_v55 }
  0xab   : > { %1239 = vst [vmem:[%s1516_s12] sm:$0xff] %v1238_v50   ;;  %v807_v58 = vadd.f32 %v1498_v24, %v771_v52  ;;  %v815_v59 = vadd.f32 %v1498_v24, %v779_v53 }
  0xac   : > { %1318 = vst [vmem:[%s1516_s12 + $0x20] sm:$0xff] %v1258_v51   ;;  %v792_v6 = vadd.f32 %v1498_v24, %v756_v60  ;;  %v800_v7 = vadd.f32 %v1498_v24, %v764_v61 }
  0xad   : > { %vm839_vm7 = vcmp.gt.f32.partialorder %v807_v58, 0.0  ;;  %v871_v62 = vmul.f32 0.1, %v807_v58  ;;  %vm847_vm8 = vcmp.gt.f32.partialorder %v815_v59, 0.0  ;;  %v879_v63 = vmul.f32 0.1, %v815_v59 }
  0xae   : > { %v856_v16 = vmul.f32 0.1, %v792_v6  ;;  %v864_v17 = vmul.f32 0.1, %v800_v7  ;;  %vm824_vm9 = vcmp.gt.f32.partialorder %v792_v6, 0.0  ;;  %vm832_vm10 = vcmp.gt.f32.partialorder %v800_v7, 0.0 }
  0xaf   : > { %v903_v2 = vsel %vm839_vm7, %v807_v58, %v871_v62  ;;  %v911_v3 = vsel %vm847_vm8, %v815_v59, %v879_v63 }
  0xb0   : > { %v1278_v4 = vpack.c.bf16 %v903_v2, %v902_v0  ;;  %v1298_v5 = vpack.c.bf16 %v911_v3, %v910_v1  ;;  %v616_v8 = vpop.f32.mrf.mxu2  ;;  %v636_v9 = vpop.f32.mrf.mxu3  ;;  %v888_v26 = vsel %vm824_vm9, %v792_v6, %v856_v16  ;;  %v896_v27 = vsel %vm832_vm10, %v800_v7, %v864_v17 }
  0xb1   : > { %v578_v10 = vpop.f32.mrf.mxu0  ;;  %v598_v11 = vpop.f32.mrf.mxu1  ;;  %v772_v14 = vmul.f32 %v1492_v20, %v616_v8  ;;  %v780_v15 = vmul.f32 %v1492_v20, %v636_v9 }
  0xb2   : > { %1322 = vst [vmem:[%s1516_s12 + $0x40] sm:$0xff] %v1278_v4   ;;  %v757_v12 = vmul.f32 %v1492_v20, %v578_v10  ;;  %v765_v13 = vmul.f32 %v1492_v20, %v598_v11 }
  0xb3   : > { %1326 = vst [vmem:[%s1516_s12 + $0x60] sm:$0xff] %v1298_v5   ;;  %v808_v23 = vadd.f32 %v1498_v24, %v772_v14  ;;  %v816_v25 = vadd.f32 %v1498_v24, %v780_v15 }
  0xb4   : > { %v793_v18 = vadd.f32 %v1498_v24, %v757_v12  ;;  %v801_v19 = vadd.f32 %v1498_v24, %v765_v13 }
  0xb5   : > { %v872_v38 = vmul.f32 0.1, %v808_v23  ;;  %v880_v39 = vmul.f32 0.1, %v816_v25  ;;  %vm840_vm13 = vcmp.gt.f32.partialorder %v808_v23, 0.0  ;;  %vm848_vm14 = vcmp.gt.f32.partialorder %v816_v25, 0.0 }
  0xb6   : > { %vm825_vm11 = vcmp.gt.f32.partialorder %v793_v18, 0.0  ;;  %v857_v21 = vmul.f32 0.1, %v793_v18  ;;  %vm833_vm12 = vcmp.gt.f32.partialorder %v801_v19, 0.0  ;;  %v865_v22 = vmul.f32 0.1, %v801_v19 }
  0xb7   : > { %v904_v46 = vsel %vm840_vm13, %v808_v23, %v872_v38  ;;  %v912_v47 = vsel %vm848_vm14, %v816_v25, %v880_v39 }
  0xb8   : > { %v889_v28 = vsel %vm825_vm11, %v793_v18, %v857_v21  ;;  %v897_v29 = vsel %vm833_vm12, %v801_v19, %v865_v22  ;;  %v618_v30 = vpop.f32.mrf.mxu2  ;;  %v638_v31 = vpop.f32.mrf.mxu3 }
  0xb9   : > { %v1243_v32 = vpack.c.bf16 %v889_v28, %v888_v26  ;;  %v1263_v33 = vpack.c.bf16 %v897_v29, %v896_v27  ;;  %v773_v34 = vmul.f32 %v1492_v20, %v618_v30  ;;  %v781_v35 = vmul.f32 %v1492_v20, %v638_v31  ;;  %v581_v36 = vpop.f32.mrf.mxu0  ;;  %v601_v37 = vpop.f32.mrf.mxu1 }
  0xba   : > { %v758_v42 = vmul.f32 %v1492_v20, %v581_v36  ;;  %v766_v43 = vmul.f32 %v1492_v20, %v601_v37 }
  0xbb   : > { %1315 = vst [vmem:[%s1516_s12 + $0x8] sm:$0xff] %v1243_v32   ;;  %v809_v40 = vadd.f32 %v1498_v24, %v773_v34  ;;  %v817_v41 = vadd.f32 %v1498_v24, %v781_v35 }
  0xbc   : > { %1319 = vst [vmem:[%s1516_s12 + $0x28] sm:$0xff] %v1263_v33   ;;  %v794_v52 = vadd.f32 %v1498_v24, %v758_v42  ;;  %v802_v53 = vadd.f32 %v1498_v24, %v766_v43 }
  0xbd   : > { %vm841_vm15 = vcmp.gt.f32.partialorder %v809_v40, 0.0  ;;  %v873_v44 = vmul.f32 0.1, %v809_v40  ;;  %vm849_vm0 = vcmp.gt.f32.partialorder %v817_v41, 0.0  ;;  %v881_v45 = vmul.f32 0.1, %v817_v41 }
  0xbe   : > { %v858_v62 = vmul.f32 0.1, %v794_v52  ;;  %v866_v63 = vmul.f32 0.1, %v802_v53  ;;  %vm826_vm1 = vcmp.gt.f32.partialorder %v794_v52, 0.0  ;;  %vm834_vm2 = vcmp.gt.f32.partialorder %v802_v53, 0.0 }
  0xbf   : > { %v905_v48 = vsel %vm841_vm15, %v809_v40, %v873_v44  ;;  %v913_v49 = vsel %vm849_vm0, %v817_v41, %v881_v45 }
  0xc0   : > { %v1283_v50 = vpack.c.bf16 %v905_v48, %v904_v46  ;;  %v1303_v51 = vpack.c.bf16 %v913_v49, %v912_v47  ;;  %v621_v54 = vpop.f32.mrf.mxu2  ;;  %v641_v55 = vpop.f32.mrf.mxu3  ;;  %v890_v6 = vsel %vm826_vm1, %v794_v52, %v858_v62  ;;  %v898_v7 = vsel %vm834_vm2, %v802_v53, %v866_v63 }
  0xc1   : > { %v583_v56 = vpop.f32.mrf.mxu0  ;;  %v603_v57 = vpop.f32.mrf.mxu1  ;;  %v774_v60 = vmul.f32 %v1492_v20, %v621_v54  ;;  %v782_v61 = vmul.f32 %v1492_v20, %v641_v55 }
  0xc2   : > { %1323 = vst [vmem:[%s1516_s12 + $0x48] sm:$0xff] %v1283_v50   ;;  %v759_v58 = vmul.f32 %v1492_v20, %v583_v56  ;;  %v767_v59 = vmul.f32 %v1492_v20, %v603_v57 }
  0xc3   : > { %1327 = vst [vmem:[%s1516_s12 + $0x68] sm:$0xff] %v1303_v51   ;;  %v810_v4 = vadd.f32 %v1498_v24, %v774_v60  ;;  %v818_v5 = vadd.f32 %v1498_v24, %v782_v61 }
  0xc4   : > { %v795_v0 = vadd.f32 %v1498_v24, %v759_v58  ;;  %v803_v1 = vadd.f32 %v1498_v24, %v767_v59 }
  0xc5   : > { %v874_v18 = vmul.f32 0.1, %v810_v4  ;;  %v882_v19 = vmul.f32 0.1, %v818_v5  ;;  %vm842_vm5 = vcmp.gt.f32.partialorder %v810_v4, 0.0  ;;  %vm850_vm6 = vcmp.gt.f32.partialorder %v818_v5, 0.0 }
  0xc6   : > { %vm827_vm3 = vcmp.gt.f32.partialorder %v795_v0, 0.0  ;;  %v859_v2 = vmul.f32 0.1, %v795_v0  ;;  %vm835_vm4 = vcmp.gt.f32.partialorder %v803_v1, 0.0  ;;  %v867_v3 = vmul.f32 0.1, %v803_v1 }
  0xc7   : > { %v906_v28 = vsel %vm842_vm5, %v810_v4, %v874_v18  ;;  %v914_v29 = vsel %vm850_vm6, %v818_v5, %v882_v19 }
  0xc8   : > { %v891_v8 = vsel %vm827_vm3, %v795_v0, %v859_v2  ;;  %v899_v9 = vsel %vm835_vm4, %v803_v1, %v867_v3  ;;  %v623_v10 = vpop.f32.mrf.mxu2  ;;  %v643_v11 = vpop.f32.mrf.mxu3 }
  0xc9   : > { %v1248_v12 = vpack.c.bf16 %v891_v8, %v890_v6  ;;  %v1268_v13 = vpack.c.bf16 %v899_v9, %v898_v7  ;;  %v775_v14 = vmul.f32 %v1492_v20, %v623_v10  ;;  %v783_v15 = vmul.f32 %v1492_v20, %v643_v11  ;;  %v586_v16 = vpop.f32.mrf.mxu0  ;;  %v606_v17 = vpop.f32.mrf.mxu1 }
  0xca   : > { %v760_v23 = vmul.f32 %v1492_v20, %v586_v16  ;;  %v768_v25 = vmul.f32 %v1492_v20, %v606_v17 }
  0xcb   : > { %1316 = vst [vmem:[%s1516_s12 + $0x10] sm:$0xff] %v1248_v12   ;;  %v811_v21 = vadd.f32 %v1498_v24, %v775_v14  ;;  %v819_v22 = vadd.f32 %v1498_v24, %v783_v15 }
  0xcc   : > { %1320 = vst [vmem:[%s1516_s12 + $0x30] sm:$0xff] %v1268_v13   ;;  %v796_v34 = vadd.f32 %v1498_v24, %v760_v23  ;;  %v804_v35 = vadd.f32 %v1498_v24, %v768_v25 }
  0xcd   : > { %vm843_vm7 = vcmp.gt.f32.partialorder %v811_v21, 0.0  ;;  %v875_v26 = vmul.f32 0.1, %v811_v21  ;;  %vm851_vm8 = vcmp.gt.f32.partialorder %v819_v22, 0.0  ;;  %v883_v27 = vmul.f32 0.1, %v819_v22 }
  0xce   : > { %v860_v44 = vmul.f32 0.1, %v796_v34  ;;  %v868_v45 = vmul.f32 0.1, %v804_v35  ;;  %vm828_vm9 = vcmp.gt.f32.partialorder %v796_v34, 0.0  ;;  %vm836_vm10 = vcmp.gt.f32.partialorder %v804_v35, 0.0 }
  0xcf   : > { %v907_v30 = vsel %vm843_vm7, %v811_v21, %v875_v26  ;;  %v915_v31 = vsel %vm851_vm8, %v819_v22, %v883_v27 }
  0xd0   : > { %v1288_v32 = vpack.c.bf16 %v907_v30, %v906_v28  ;;  %v1308_v33 = vpack.c.bf16 %v915_v31, %v914_v29  ;;  %v626_v36 = vpop.f32.mrf.mxu2  ;;  %v646_v37 = vpop.f32.mrf.mxu3  ;;  %v892_v52 = vsel %vm828_vm9, %v796_v34, %v860_v44  ;;  %v900_v53 = vsel %vm836_vm10, %v804_v35, %v868_v45 }
  0xd1   : > { %v588_v38 = vpop.f32.mrf.mxu0  ;;  %v608_v39 = vpop.f32.mrf.mxu1  ;;  %v776_v42 = vmul.f32 %v1492_v20, %v626_v36  ;;  %v784_v43 = vmul.f32 %v1492_v20, %v646_v37 }
  0xd2   : > { %1324 = vst [vmem:[%s1516_s12 + $0x50] sm:$0xff] %v1288_v32   ;;  %v761_v40 = vmul.f32 %v1492_v20, %v588_v38  ;;  %v769_v41 = vmul.f32 %v1492_v20, %v608_v39 }
  0xd3   : > { %1328 = vst [vmem:[%s1516_s12 + $0x70] sm:$0xff] %v1308_v33   ;;  %v812_v50 = vadd.f32 %v1498_v24, %v776_v42  ;;  %v820_v51 = vadd.f32 %v1498_v24, %v784_v43 }
  0xd4   : > { %v797_v46 = vadd.f32 %v1498_v24, %v761_v40  ;;  %v805_v47 = vadd.f32 %v1498_v24, %v769_v41 }
  0xd5   : > { %v876_v62 = vmul.f32 0.1, %v812_v50  ;;  %v884_v63 = vmul.f32 0.1, %v820_v51  ;;  %vm844_vm13 = vcmp.gt.f32.partialorder %v812_v50, 0.0  ;;  %vm852_vm14 = vcmp.gt.f32.partialorder %v820_v51, 0.0 }
  0xd6   : > { %vm829_vm11 = vcmp.gt.f32.partialorder %v797_v46, 0.0  ;;  %v861_v48 = vmul.f32 0.1, %v797_v46  ;;  %vm837_vm12 = vcmp.gt.f32.partialorder %v805_v47, 0.0  ;;  %v869_v49 = vmul.f32 0.1, %v805_v47 }
  0xd7   : > { %v908_v4 = vsel %vm844_vm13, %v812_v50, %v876_v62  ;;  %v916_v5 = vsel %vm852_vm14, %v820_v51, %v884_v63 }
  0xd8   : > { %v893_v54 = vsel %vm829_vm11, %v797_v46, %v861_v48  ;;  %v901_v55 = vsel %vm837_vm12, %v805_v47, %v869_v49  ;;  %v628_v56 = vpop.f32.mrf.mxu2  ;;  %v648_v57 = vpop.f32.mrf.mxu3 }
  0xd9   : > { %v1253_v58 = vpack.c.bf16 %v893_v54, %v892_v52  ;;  %v1273_v59 = vpack.c.bf16 %v901_v55, %v900_v53  ;;  %v777_v60 = vmul.f32 %v1492_v20, %v628_v56  ;;  %v785_v61 = vmul.f32 %v1492_v20, %v648_v57 }
  0xdb   : > { %1317 = vst [vmem:[%s1516_s12 + $0x18] sm:$0xff] %v1253_v58   ;;  %v813_v0 = vadd.f32 %v1498_v24, %v777_v60  ;;  %v821_v1 = vadd.f32 %v1498_v24, %v785_v61 }
  0xdc   : > { %1321 = vst [vmem:[%s1516_s12 + $0x38] sm:$0xff] %v1273_v59  }
  0xdd   : > { %vm845_vm15 = vcmp.gt.f32.partialorder %v813_v0, 0.0  ;;  %v877_v2 = vmul.f32 0.1, %v813_v0  ;;  %vm853_vm0 = vcmp.gt.f32.partialorder %v821_v1, 0.0  ;;  %v885_v3 = vmul.f32 0.1, %v821_v1 }
  0xdf   : > { %v909_v6 = vsel %vm845_vm15, %v813_v0, %v877_v2  ;;  %v917_v20 = vsel %vm853_vm0, %v821_v1, %v885_v3 }
  0xe0   : > { %v1293_v7 = vpack.c.bf16 %v909_v6, %v908_v4  ;;  %v1313_v8 = vpack.c.bf16 %v917_v20, %v916_v5 }
  0xe2   : > { %1325 = vst [vmem:[%s1516_s12 + $0x58] sm:$0xff] %v1293_v7  }
  0xe3   : > { %1329 = vst [vmem:[%s1516_s12 + $0x78] sm:$0xff] %v1313_v8  }
  0xe4 PF: > { %s14_s17 = sadd.s32 1, %s1390_s17   ;;  %s1600_s15 = smov %s1386_s16 }
  0xe5   : > { %p11_p5 = scmp.ge.s32.totalorder %s14_s17, 4   ;;  %s1601_s16 = smov %s1603_s18 }
  0xe7   :  { %13 = sbr.rel (!%p11_p5) target bundleno = 2 (0x2), region = 83 }

// kernel: _lambda_.3
= control target key start
LH: loop header
LB: loop body
LE: loop exit
PB: predicated region body
PF: predicated region fallthrough
CT: control target
= control target key end

     0   :  { %10 = vsyncpa [#allocation4], 0  ;;  %s2738_s0 = inlined_call_operand.vmem [shape: bf16[512,288], index: 0, kind: input, shape index: {}]   ;;  %s2739_s1 = inlined_call_operand.vmem [shape: bf16[288,128], index: 1, kind: input, shape index: {}]   ;;  %s2740_s2 = inlined_call_operand.vmem [shape: f32[1,128], index: 2, kind: input, shape index: {}]   ;;  %s2741_s3 = inlined_call_operand.vmem [shape: f32[1,128], index: 3, kind: input, shape index: {}]   ;;  %s2742_s4 = inlined_call_operand.vmem [shape: f32[512,128], index: 4, kind: input, shape index: {}]   ;;  %s2743_s5 = inlined_call_operand.hbm [shape: f32[512,128], index: 5, kind: output, shape index: {}]  }
   0x1   :  { %12 = vsyncpa [#allocation4 + $0x1], 0  ;;  %s2266_s18 = smov 0   ;;  %s2268_s19 = smov 0  }
   0x2   :  { %s2270_s20 = smov 0   ;;  %s2272_s21 = smov 0  }
   0x3   :  { %s2274_s22 = smov 0   ;;  %s2276_s23 = smov 0  }
   0x4 LB: > { %s1711_s24 = sadd.s32 4294967295, %s2232_s23   ;;  %s1712_s25 = sadd.s32 4294967294, %s2232_s23   ;;  %s2232_s23 = sphi %s2276_s23, %s18_s23   ;;  %s2228_s22 = sphi %s2274_s22, %s2750_s22   ;;  %s2224_s21 = sphi %s2272_s21, %s2749_s21   ;;  %s2220_s20 = sphi %s2270_s20, %s2748_s20   ;;  %s2216_s19 = sphi %s2268_s19, %s2747_s19   ;;  %s2212_s18 = sphi %s2266_s18, %s2746_s18  }
   0x5   : > { %s37_s26 = sadd.s32 1, %s2228_s22  ;;  %s182_s27 = sadd.s32 1, %s2220_s20 }
   0x6   : > { %p39_p0 = scmp.ge.s32.totalorder %s37_s26, 2  ;;  %p192_p1 = scmp.ne.s32.totalorder %s2220_s20, %s2216_s19 }
   0x7   : > { %p193_p2 = scmp.eq.s32.totalorder %s1711_s24, 1  ;;  %p198_p3 = scmp.ne.s32.totalorder %s2216_s19, %s2212_s18 }
   0x8   : > { %s2752_s26 = smov (%p39_p0, %s37_s26), 0  ;;  %p199_p5 = scmp.eq.s32.totalorder %s1712_s25, 1 }
   0x9   : > { %p2306_p4 = por %p193_p2, %p192_p1  ;;  %s177_s29 = ssub.s32 %s2228_s22, %s2752_s26 }
   0xa   : > { %p1718_p6 = scmp.ge.s32.totalorder %s2232_s23, 1  ;;  %p180_p7 = scmp.eq.s32.totalorder %s177_s29, 0 }
   0xb   : > { %p2313_p8 = por %p199_p5, %p198_p3  ;;  %p268_p9 = scmp.lt.s32.totalorder %s2232_s23, 3 }
   0xc   : > { %s2319_s6 = scalar_select %p180_p7, %s2220_s20, %s182_s27  }
   0xd   : > { %p269_p10 = pnand %p1718_p6, %p268_p9 }
   0xe   : > { %s1720_s13 = sshll.u32 (!%p269_p10), %s2224_s21, 5  ;;  %s320_s11 = sand.u32 (!%p269_p10), 1, %s2216_s19  }
   0xf   : > { %272 = sbr.rel (%p269_p10) target bundleno = 393 (0x189), region = 40  ;;  %p325_p11 = scmp.lt.s32.totalorder (!%p269_p10), %s1720_s13, 63 }
  0x10   : > { %s1719_s16 = sshll.u32 (!%p269_p10), %s320_s11, 8  ;;  %s2174_s15 = scalar_lea.hbm (!%p269_p10), %s2743_s5, 512 }
  0x11   : > { %s2517_s17 = scalar_lea.vmem (!%p269_p10), [#allocation3], %s1719_s16 }
  0x12   : > { %s1570_s29 = sshll.u32 (!%p269_p10), %s2517_s17, 4  ;;  %s1571_s29 = int_to_ptr.vmem [resolvable:$true] %s1570_s29 }
  0x14   : > { %v2064_v0 = vld [vmem:[%s2739_s1 + $0x38] sm:$0xff]  ;;  %v2332_v2 = vld [vmem:[%s2739_s1 + $0x88] sm:$0xff]  ;;  %v2063_v3 = vld [vmem:[%s2739_s1 + $0x30] sm:$0xff]  ;;  %s2754_s13 = smov (!%p325_p11, %s1720_s13), 63  ;;  %vm877_vm0 = vcmask 261120  }
  0x15   : > { %v2327_v1 = vld [vmem:[%s2739_s1 + $0x78] sm:$0xff]  ;;  %926 = vmatpush.bf16.msra.mxu0 %v2064_v0  ;;  %2076 = vmatpush.bf16.msra.mxu3 %v2064_v0  ;;  %v2071_v4 = vld [vmem:[%s2739_s1 + $0x70] sm:$0xff]  ;;  %v2346_v5 = vld [vmem:[%s2739_s1 + $0x80] sm:$0xff]  ;;  %s2094_s27 = smul.u32 12, %s2754_s13  ;;  %s1723_s8 = sshll.u32 %s2754_s13, 3 }
  0x16   : > { %1015 = vmatpush.bf16.msra.mxu1 %v2327_v1  ;;  %1110 = vmatpush.bf16.msra.mxu2 %v2332_v2  ;;  %v2062_v6 = vld [vmem:[%s2739_s1 + $0x28] sm:$0xff]  ;;  %v2061_v11 = vld [vmem:[%s2739_s1 + $0x20] sm:$0xff]  ;;  %v2060_v13 = vld [vmem:[%s2739_s1 + $0x18] sm:$0xff]  ;;  %s2501_s13 = scalar_lea.vmem %s2742_s4, %s1723_s8 }
  0x17   : > { %v2070_v7 = vld [vmem:[%s2739_s1 + $0x68] sm:$0xff]  ;;  %s2361_s12 = scalar_lea.vmem %s2738_s0, %s2094_s27  ;;  %v2069_v12 = vld [vmem:[%s2739_s1 + $0x60] sm:$0xff]  ;;  %v2068_v14 = vld [vmem:[%s2739_s1 + $0x58] sm:$0xff] }
  0x18   : > { %v1734_v8 = vld [vmem:[%s2361_s12 + $0x8] sm:$0xf]  ;;  %v2011_v9 = vld [vmem:[%s2361_s12 + $0x10] sm:$0xf0]  ;;  %v1746_v17 = vld [vmem:[%s2361_s12 + $0x20] sm:$0xf] }
  0x19   : > { %927 = vmatpush.bf16.msra.mxu0 %v2063_v3  ;;  %2077 = vmatpush.bf16.msra.mxu3 %v2063_v3  ;;  %v1735_v10 = vor.u32 %v2011_v9, %v1734_v8  ;;  %v2059_v15 = vld [vmem:[%s2739_s1 + $0x10] sm:$0xff]  ;;  %v2014_v18 = vld [vmem:[%s2361_s12 + $0x28] sm:$0xf0]  ;;  %v2057_v22 = vld [vmem:[%s2739_s1] sm:$0xff] }
  0x1a   : > { %1016 = vmatpush.bf16.msra.mxu1 %v2071_v4  ;;  %1111 = vmatpush.bf16.msra.mxu2 %v2346_v5  ;;  %v2067_v16 = vld [vmem:[%s2739_s1 + $0x50] sm:$0xff]  ;;  %v2058_v19 = vld [vmem:[%s2739_s1 + $0x8] sm:$0xff]  ;;  %v1747_v21 = vor.u32 %v2014_v18, %v1746_v17  ;;  %v1726_v23 = vld [vmem:[%s2361_s12] sm:$0xf] }
  0x1b   : > { %v2066_v20 = vld [vmem:[%s2739_s1 + $0x48] sm:$0xff]  ;;  %v1870_v25 = vld [vmem:[%s2361_s12 + $0x120] sm:$0xf]  ;;  %v2009_v28 = vld [vmem:[%s2361_s12 + $0x4] sm:$0xf] }
  0x1c   : > { %v2010_v24 = vld [vmem:[%s2361_s12 + $0x8] sm:$0xf0]  ;;  %v2065_v27 = vld [vmem:[%s2739_s1 + $0x40] sm:$0xff]  ;;  %v1728_v29 = vld [vmem:[%s2361_s12 + $0xc] sm:$0xf0] }
  0x1d   : > { %928 = vmatpush.bf16.msra.mxu0 %v2062_v6  ;;  %2078 = vmatpush.bf16.msra.mxu3 %v2062_v6  ;;  %v2046_v26 = vld [vmem:[%s2361_s12 + $0x128] sm:$0xf0]  ;;  %v1727_v30 = vor.u32 %v2010_v24, %v1726_v23  ;;  %v1731_v32 = vor.u32 %v2009_v28, %v1728_v29  ;;  %v1758_v33 = vld [vmem:[%s2361_s12 + $0x38] sm:$0xf]  ;;  %v2017_v34 = vld [vmem:[%s2361_s12 + $0x40] sm:$0xf0] }
  0x1e   : > { %1017 = vmatpush.bf16.msra.mxu1 %v2070_v7  ;;  %1988 = vmatmul.msk.bf16.vlgmr.msra.gmra.mxu2 %vm877_vm0, %v1735_v10  ;;  %v1871_v31 = vor.u32 %v2046_v26, %v1870_v25  ;;  %v1759_v35 = vor.u32 %v2017_v34, %v1758_v33  ;;  %v1738_v36 = vld [vmem:[%s2361_s12 + $0x18] sm:$0xf]  ;;  %v2013_v37 = vld [vmem:[%s2361_s12 + $0x20] sm:$0xf0]  ;;  %v2012_v40 = vld [vmem:[%s2361_s12 + $0x1c] sm:$0xf] }
  0x1f   : > { %v1882_v38 = vld [vmem:[%s2361_s12 + $0x138] sm:$0xf]  ;;  %v2049_v39 = vld [vmem:[%s2361_s12 + $0x140] sm:$0xf0]  ;;  %v1740_v41 = vld [vmem:[%s2361_s12 + $0x24] sm:$0xf0]  ;;  %v1739_v42 = vor.u32 %v2013_v37, %v1738_v36 }
  0x20   : > { %v1883_v43 = vor.u32 %v2049_v39, %v1882_v38  ;;  %v1743_v44 = vor.u32 %v2012_v40, %v1740_v41  ;;  %v1770_v45 = vld [vmem:[%s2361_s12 + $0x50] sm:$0xf]  ;;  %v2020_v46 = vld [vmem:[%s2361_s12 + $0x58] sm:$0xf0]  ;;  %v2015_v52 = vld [vmem:[%s2361_s12 + $0x34] sm:$0xf] }
  0x21   : > { %929 = vmatpush.bf16.msra.mxu0 %v2061_v11  ;;  %2079 = vmatpush.bf16.msra.mxu3 %v2061_v11  ;;  %v1771_v47 = vor.u32 %v2020_v46, %v1770_v45  ;;  %v1750_v48 = vld [vmem:[%s2361_s12 + $0x30] sm:$0xf]  ;;  %v2016_v49 = vld [vmem:[%s2361_s12 + $0x38] sm:$0xf0]  ;;  %v1752_v53 = vld [vmem:[%s2361_s12 + $0x3c] sm:$0xf0] }
  0x22   : > { %1018 = vmatpush.bf16.msra.mxu1 %v2069_v12  ;;  %v1894_v50 = vld [vmem:[%s2361_s12 + $0x150] sm:$0xf]  ;;  %v2052_v51 = vld [vmem:[%s2361_s12 + $0x158] sm:$0xf0]  ;;  %v1751_v54 = vor.u32 %v2016_v49, %v1750_v48  ;;  %v1755_v56 = vor.u32 %v2015_v52, %v1752_v53  ;;  %v1782_v57 = vld [vmem:[%s2361_s12 + $0x68] sm:$0xf] }
  0x23   : > { %v1895_v55 = vor.u32 %v2052_v51, %v1894_v50  ;;  %v2023_v58 = vld [vmem:[%s2361_s12 + $0x70] sm:$0xf0]  ;;  %v1762_v60 = vld [vmem:[%s2361_s12 + $0x48] sm:$0xf]  ;;  %v2018_v0 = vld [vmem:[%s2361_s12 + $0x4c] sm:$0xf] }
  0x24   : > { %v1783_v59 = vor.u32 %v2023_v58, %v1782_v57  ;;  %v2019_v61 = vld [vmem:[%s2361_s12 + $0x50] sm:$0xf0]  ;;  %v1906_v62 = vld [vmem:[%s2361_s12 + $0x168] sm:$0xf]  ;;  %v2026_v6 = vld [vmem:[%s2361_s12 + $0x88] sm:$0xf0] }
  0x25   : > { %930 = vmatpush.bf16.msra.mxu0 %v2060_v13  ;;  %2080 = vmatpush.bf16.msra.mxu3 %v2060_v13  ;;  %v2055_v63 = vld [vmem:[%s2361_s12 + $0x170] sm:$0xf0]  ;;  %v1774_v8 = vld [vmem:[%s2361_s12 + $0x60] sm:$0xf]  ;;  %v2022_v9 = vld [vmem:[%s2361_s12 + $0x68] sm:$0xf0] }
  0x26   : > { %1019 = vmatpush.bf16.msra.mxu1 %v2068_v14  ;;  %v1907_v3 = vor.u32 %v2055_v63, %v1906_v62  ;;  %v2045_v10 = vld [vmem:[%s2361_s12 + $0x124] sm:$0xf]  ;;  %v1872_v11 = vld [vmem:[%s2361_s12 + $0x12c] sm:$0xf0]  ;;  %v1806_v17 = vld [vmem:[%s2361_s12 + $0x98] sm:$0xf] }
  0x27   : > { %v1776_v13 = vld [vmem:[%s2361_s12 + $0x6c] sm:$0xf0]  ;;  %v2029_v18 = vld [vmem:[%s2361_s12 + $0xa0] sm:$0xf0]  ;;  %v1884_v23 = vld [vmem:[%s2361_s12 + $0x144] sm:$0xf0] }
  0x28   : > { %v2024_v24 = vld [vmem:[%s2361_s12 + $0x7c] sm:$0xf]  ;;  %v1788_v25 = vld [vmem:[%s2361_s12 + $0x84] sm:$0xf0]  ;;  %v1818_v29 = vld [vmem:[%s2361_s12 + $0xb0] sm:$0xf] }
  0x29   : > { %931 = vmatpush.bf16.msra.mxu0 %v2059_v15  ;;  %2081 = vmatpush.bf16.msra.mxu3 %v2059_v15  ;;  %v1875_v15 = vor.u32 %v2045_v10, %v1872_v11  ;;  %v1791_v28 = vor.u32 %v2024_v24, %v1788_v25  ;;  %v2028_v33 = vld [vmem:[%s2361_s12 + $0x98] sm:$0xf0]  ;;  %v2051_v34 = vld [vmem:[%s2361_s12 + $0x154] sm:$0xf]  ;;  %v1800_v37 = vld [vmem:[%s2361_s12 + $0x9c] sm:$0xf0] }
  0x2a   : > { %1020 = vmatpush.bf16.msra.mxu1 %v2067_v16  ;;  %v2027_v36 = vld [vmem:[%s2361_s12 + $0x94] sm:$0xf]  ;;  %v1830_v41 = vld [vmem:[%s2361_s12 + $0xc8] sm:$0xf]  ;;  %v2054_v46 = vld [vmem:[%s2361_s12 + $0x16c] sm:$0xf] }
  0x2b   : > { %v1803_v40 = vor.u32 %v2027_v36, %v1800_v37  ;;  %v2031_v45 = vld [vmem:[%s2361_s12 + $0xb0] sm:$0xf0]  ;;  %v2030_v48 = vld [vmem:[%s2361_s12 + $0xac] sm:$0xf]  ;;  %v1812_v49 = vld [vmem:[%s2361_s12 + $0xb4] sm:$0xf0] }
  0x2c   : > { %v1815_v53 = vor.u32 %v2030_v48, %v1812_v49  ;;  %v1822_v58 = vld [vmem:[%s2361_s12 + $0xc0] sm:$0xf]  ;;  %v2033_v62 = vld [vmem:[%s2361_s12 + $0xc4] sm:$0xf]  ;;  %v1824_v63 = vld [vmem:[%s2361_s12 + $0xcc] sm:$0xf0] }
  0x2d   : > { %932 = vmatpush.bf16.msra.mxu0 %v2058_v19  ;;  %2082 = vmatpush.bf16.msra.mxu3 %v2058_v19  ;;  %v1807_v19 = vor.u32 %v2029_v18, %v1806_v17  ;;  %v2037_v25 = vld [vmem:[%s2361_s12 + $0xe0] sm:$0xf0]  ;;  %v1866_v48 = vld [vmem:[%s2361_s12 + $0x110] sm:$0xf]  ;;  %v2044_v49 = vld [vmem:[%s2361_s12 + $0x118] sm:$0xf0] }
  0x2e   : > { %1021 = vmatpush.bf16.msra.mxu1 %v2066_v20  ;;  %1989 = vmatmul.msk.bf16.gmra.mxu2 %vm877_vm0, %v1747_v21  ;;  %v2025_v21 = vld [vmem:[%s2361_s12 + $0x80] sm:$0xf0] }
  0x31   : > { %933 = vmatpush.bf16.msra.mxu0 %v2057_v22  ;;  %2083 = vmatpush.bf16.msra.mxu3 %v2057_v22  ;;  %v2048_v22 = vld [vmem:[%s2361_s12 + $0x13c] sm:$0xf] }
  0x32   : > { %1022 = vmatpush.bf16.msra.mxu1 %v2065_v27 }
  0x34   : > { %934 = vmatmul.bf16.vlgmr.msra.gmra.mxu0 %v1727_v30  ;;  %994 = vmatmul.bf16.vlgmr.msra.gmra.mxu3 %v1871_v31  ;;  %v2032_v30 = vld [vmem:[%s2361_s12 + $0xb8] sm:$0xf0] }
  0x35   : > { %2084 = vmatpush.bf16.msrb.mxu3 %v2327_v1  ;;  %1023 = vmatmul.bf16.vlgmr.msra.gmra.mxu1 %v1731_v32  ;;  %v1764_v1 = vld [vmem:[%s2361_s12 + $0x54] sm:$0xf0]  ;;  %v1819_v31 = vor.u32 %v2032_v30, %v1818_v29  ;;  %v1798_v32 = vld [vmem:[%s2361_s12 + $0x90] sm:$0xf]  ;;  %v2036_v29 = vld [vmem:[%s2361_s12 + $0xdc] sm:$0xf] }
  0x36   : > { %v1799_v38 = vor.u32 %v2028_v33, %v1798_v32  ;;  %v1836_v30 = vld [vmem:[%s2361_s12 + $0xe4] sm:$0xf0] }
  0x39   : > { %2085 = vmatpush.bf16.msrb.mxu3 %v2071_v4  ;;  %v1767_v4 = vor.u32 %v2018_v0, %v1764_v1 }
  0x3d   : > { %2086 = vmatpush.bf16.msrb.mxu3 %v2070_v7 }
  0x3e   : > { %1990 = vmatmul.msk.bf16.gmra.mxu2 %vm877_vm0, %v1759_v35  ;;  %v1896_v35 = vld [vmem:[%s2361_s12 + $0x15c] sm:$0xf0] }
  0x3f   : > { %v1899_v39 = vor.u32 %v2051_v34, %v1896_v35 }
  0x41   : > { %2087 = vmatpush.bf16.msrb.mxu3 %v2069_v12  ;;  %v2021_v12 = vld [vmem:[%s2361_s12 + $0x64] sm:$0xf] }
  0x44   : > { %939 = vmatmul.bf16.gmra.mxu0 %v1739_v42  ;;  %999 = vmatmul.bf16.gmra.mxu3 %v1883_v43  ;;  %v2035_v42 = vld [vmem:[%s2361_s12 + $0xd0] sm:$0xf0] }
  0x45   : > { %2088 = vmatpush.bf16.msrb.mxu3 %v2068_v14  ;;  %1028 = vmatmul.bf16.gmra.mxu1 %v1743_v44  ;;  %v1775_v14 = vor.u32 %v2022_v9, %v1774_v8  ;;  %v1831_v43 = vor.u32 %v2035_v42, %v1830_v41  ;;  %v1810_v44 = vld [vmem:[%s2361_s12 + $0xa8] sm:$0xf]  ;;  %v2490_v9 = vld [vmem:[%s2741_s3] ss:$0 sm:$0xff] }
  0x46   : > { %v1811_v50 = vor.u32 %v2031_v45, %v1810_v44  ;;  %v1461_v41 = vld [vmem:[%s2501_s13 + $0x8] sm:$0xff] }
  0x49   : > { %2089 = vmatpush.bf16.msrb.mxu3 %v2067_v16  ;;  %v1779_v16 = vor.u32 %v2021_v12, %v1776_v13  ;;  %v1854_v12 = vld [vmem:[%s2361_s12 + $0xf8] sm:$0xf]  ;;  %v2041_v13 = vld [vmem:[%s2361_s12 + $0x100] sm:$0xf0] }
  0x4a   : > { %v1855_v18 = vor.u32 %v2041_v13, %v1854_v12  ;;  %v1463_v13 = vld [vmem:[%s2501_s13 + $0x18] sm:$0xff] }
  0x4d   : > { %2090 = vmatpush.bf16.msrb.mxu3 %v2066_v20  ;;  %v1786_v20 = vld [vmem:[%s2361_s12 + $0x78] sm:$0xf] }
  0x4e   : > { %1991 = vmatmul.msk.bf16.gmra.mxu2 %vm877_vm0, %v1771_v47  ;;  %v1787_v26 = vor.u32 %v2025_v21, %v1786_v20  ;;  %v1908_v47 = vld [vmem:[%s2361_s12 + $0x174] sm:$0xf0]  ;;  %v1460_v20 = vld [vmem:[%s2501_s13] sm:$0xff] }
  0x4f   : > { %v1911_v51 = vor.u32 %v2054_v46, %v1908_v47 }
  0x51   : > { %2091 = vmatpush.bf16.msrb.mxu3 %v2065_v27  ;;  %v1887_v27 = vor.u32 %v2048_v22, %v1884_v23  ;;  %v1834_v22 = vld [vmem:[%s2361_s12 + $0xd8] sm:$0xf] }
  0x52   : > { %v1835_v33 = vor.u32 %v2037_v25, %v1834_v22 }
  0x54   : > { %944 = vmatmul.bf16.gmra.mxu0 %v1751_v54  ;;  %1004 = vmatmul.bf16.gmra.mxu3 %v1895_v55  ;;  %v1842_v54 = vld [vmem:[%s2361_s12 + $0xe0] sm:$0xf]  ;;  %v2038_v55 = vld [vmem:[%s2361_s12 + $0xe8] sm:$0xf0] }
  0x55   : > { %2092 = vmatpush.bf16.msra.mxu3 %v2332_v2  ;;  %1033 = vmatmul.bf16.gmra.mxu1 %v1755_v56  ;;  %v1763_v2 = vor.u32 %v2019_v61, %v1762_v60  ;;  %v1843_v57 = vor.u32 %v2038_v55, %v1842_v54  ;;  %v1902_v60 = vld [vmem:[%s2361_s12 + $0x158] sm:$0xf]  ;;  %v2053_v61 = vld [vmem:[%s2361_s12 + $0x160] sm:$0xf0]  ;;  %v1867_v54 = vor.u32 %v2044_v49, %v1866_v48  ;;  %v1465_v48 = vld [vmem:[%s2501_s13 + $0x28] sm:$0xff] }
  0x56   : > { %v1903_v1 = vor.u32 %v2053_v61, %v1902_v60  ;;  %v1846_v60 = vld [vmem:[%s2361_s12 + $0xf0] sm:$0xf]  ;;  %v2040_v61 = vld [vmem:[%s2361_s12 + $0xf8] sm:$0xf0] }
  0x59   : > { %2093 = vmatpush.bf16.msra.mxu3 %v2346_v5  ;;  %v1794_v5 = vld [vmem:[%s2361_s12 + $0x80] sm:$0xf] }
  0x5a   : > { %v1795_v7 = vor.u32 %v2026_v6, %v1794_v5 }
  0x5e   : > { %1992 = vmatmul.msk.bf16.gmra.mxu2 %vm877_vm0, %v1783_v59  ;;  %v2034_v59 = vld [vmem:[%s2361_s12 + $0xc8] sm:$0xf0] }
  0x5f   : > { %v1823_v0 = vor.u32 %v2034_v59, %v1822_v58 }
  0x64   : > { %949 = vmatmul.bf16.gmra.mxu0 %v1763_v2  ;;  %1009 = vmatmul.bf16.gmra.mxu3 %v1907_v3 }
  0x65   : > { %1038 = vmatmul.bf16.gmra.mxu1 %v1767_v4  ;;  %v1827_v4 = vor.u32 %v2033_v62, %v1824_v63  ;;  %v2039_v63 = vld [vmem:[%s2361_s12 + $0xf4] sm:$0xf] }
  0x6e   : > { %1993 = vmatmul.msk.bf16.gmra.mxu2 %vm877_vm0, %v1795_v7  ;;  %v2483_v7 = vld [vmem:[%s2740_s2] ss:$0 sm:$0xff] }
  0x74   : > { %954 = vmatmul.bf16.gmra.mxu0 %v1775_v14  ;;  %1083 = vmatmul.bf16.vlgmr.msrb.gmra.mxu3 %v1875_v15 }
  0x75   : > { %1043 = vmatmul.bf16.gmra.mxu1 %v1779_v16 }
  0x7e   : > { %1994 = vmatmul.msk.bf16.gmra.mxu2 %vm877_vm0, %v1807_v19 }
  0x84   : > { %959 = vmatmul.bf16.gmra.mxu0 %v1787_v26  ;;  %1088 = vmatmul.bf16.gmra.mxu3 %v1887_v27  ;;  %v1914_v26 = vld [vmem:[%s2361_s12 + $0x170] sm:$0xf]  ;;  %v2056_v27 = vld [vmem:[%s2361_s12 + $0x178] sm:$0xf0] }
  0x85   : > { %1048 = vmatmul.bf16.gmra.mxu1 %v1791_v28  ;;  %v1915_v34 = vor.u32 %v2056_v27, %v1914_v26 }
  0x8e   : > { %1995 = vmatmul.msk.bf16.gmra.mxu2 %vm877_vm0, %v1819_v31 }
  0x94   : > { %964 = vmatmul.bf16.gmra.mxu0 %v1799_v38  ;;  %1093 = vmatmul.bf16.gmra.mxu3 %v1899_v39  ;;  %v1839_v38 = vor.u32 %v2036_v29, %v1836_v30 }
  0x95   : > { %1053 = vmatmul.bf16.gmra.mxu1 %v1803_v40 }
  0x9e   : > { %1996 = vmatmul.msk.bf16.gmra.mxu2 %vm877_vm0, %v1831_v43 }
  0xa1   : > { %v1113_v52 = vpop.f32.mrf.mxu2 }
  0xa4   : > { %969 = vmatmul.bf16.gmra.mxu0 %v1811_v50  ;;  %1098 = vmatmul.bf16.gmra.mxu3 %v1911_v51 }
  0xa5   : > { %1058 = vmatmul.bf16.gmra.mxu1 %v1815_v53 }
  0xa9   : > { %v1115_v56 = vpop.f32.mrf.mxu2 }
  0xae   : > { %1997 = vmatmul.msk.bf16.gmra.mxu2 %vm877_vm0, %v1843_v57 }
  0xb1   : > { %v1118_v2 = vpop.f32.mrf.mxu2  ;;  %v935_v3 = vpop.f32.mrf.mxu0 }
  0xb2   : > { %v1024_v5 = vpop.f32.mrf.mxu1 }
  0xb3   : > { %v1025_v6 = vadd.f32 %v1024_v5, %v935_v3  ;;  %v1847_v3 = vor.u32 %v2040_v61, %v1846_v60 }
  0xb4   : > { %974 = vmatmul.bf16.gmra.mxu0 %v1823_v0  ;;  %2002 = vmatmul.msk.bf16.vlgmr.msra.gmra.mxu3 %vm877_vm0, %v1903_v1  ;;  %v1848_v0 = vld [vmem:[%s2361_s12 + $0xfc] sm:$0xf0] }
  0xb5   : > { %v1114_v8 = vadd.f32 %v1113_v52, %v1025_v6  ;;  %1063 = vmatmul.bf16.gmra.mxu1 %v1827_v4 }
  0xb7   : > { %v1296_v10 = vmul.f32 %v2483_v7, %v1114_v8  ;;  %v2494_v11 = vpop.f32.mrf.mxu3  ;;  %v1851_v8 = vor.u32 %v2039_v63, %v1848_v0  ;;  %v1466_v63 = vld [vmem:[%s2501_s13 + $0x30] sm:$0xff] }
  0xb9   : > { %v1332_v14 = vadd.f32 %v2490_v9, %v1296_v10  ;;  %v1120_v15 = vpop.f32.mrf.mxu2  ;;  %v937_v16 = vpop.f32.mrf.mxu0 }
  0xba   : > { %v1026_v17 = vpop.f32.mrf.mxu1 }
  0xbb   : > { %vm1364_vm1 = vcmp.gt.f32.partialorder %v1332_v14, 0.0  ;;  %v1396_v19 = vmul.f32 0.1, %v1332_v14  ;;  %v1027_v21 = vadd.f32 %v1026_v17, %v937_v16 }
  0xbd   : > { %v1428_v23 = vsel %vm1364_vm1, %v1332_v14, %v1396_v19  ;;  %v1116_v24 = vadd.f32 %v1115_v56, %v1027_v21  ;;  %v1462_v56 = vld [vmem:[%s2501_s13 + $0x10] sm:$0xff] }
  0xbe   : > { %v1492_v28 = vadd.f32 %v1460_v20, %v1428_v23  ;;  %1998 = vmatmul.msk.bf16.gmra.mxu2 %vm877_vm0, %v1855_v18  ;;  %v1878_v20 = vld [vmem:[%s2361_s12 + $0x128] sm:$0xf]  ;;  %v2047_v21 = vld [vmem:[%s2361_s12 + $0x130] sm:$0xf0] }
  0xbf   : > { %v1297_v31 = vmul.f32 %v2483_v7, %v1116_v24  ;;  %v2515_v32 = vpop.f32.mrf.mxu3  ;;  %v1879_v26 = vor.u32 %v2047_v21, %v1878_v20 }
  0xc0   : > { %1524 = vst [vmem:[%s2517_s17] sm:$0xff] %v1492_v28  ;;  %v1464_v28 = vld [vmem:[%s2501_s13 + $0x20] sm:$0xff] }
  0xc1   : > { %v1333_v35 = vadd.f32 %v2490_v9, %v1297_v31  ;;  %v1123_v36 = vpop.f32.mrf.mxu2  ;;  %v940_v37 = vpop.f32.mrf.mxu0 }
  0xc2   : > { %v1029_v39 = vpop.f32.mrf.mxu1 }
  0xc3   : > { %vm1365_vm2 = vcmp.gt.f32.partialorder %v1333_v35, 0.0  ;;  %v1397_v40 = vmul.f32 0.1, %v1333_v35  ;;  %v1030_v42 = vadd.f32 %v1029_v39, %v940_v37  ;;  %v1860_v37 = vld [vmem:[%s2361_s12 + $0x114] sm:$0xf0] }
  0xc4   : > { %979 = vmatmul.bf16.gmra.mxu0 %v1835_v33  ;;  %2003 = vmatmul.msk.bf16.gmra.mxu3 %vm877_vm0, %v1915_v34  ;;  %v1858_v33 = vld [vmem:[%s2361_s12 + $0x108] sm:$0xf]  ;;  %v2043_v34 = vld [vmem:[%s2361_s12 + $0x110] sm:$0xf0] }
  0xc5   : > { %v1429_v43 = vsel %vm1365_vm2, %v1333_v35, %v1397_v40  ;;  %v1119_v44 = vadd.f32 %v1118_v2, %v1030_v42  ;;  %1068 = vmatmul.bf16.gmra.mxu1 %v1839_v38  ;;  %v1859_v40 = vor.u32 %v2043_v34, %v1858_v33 }
  0xc6   : > { %v1493_v45 = vadd.f32 %v1461_v41, %v1429_v43 }
  0xc7   : > { %v1298_v46 = vmul.f32 %v2483_v7, %v1119_v44  ;;  %v2524_v47 = vpop.f32.mrf.mxu3 }
  0xc8   : > { %1525 = vst [vmem:[%s2517_s17 + $0x8] sm:$0xff] %v1493_v45 }
  0xc9   : > { %v1334_v50 = vadd.f32 %v2490_v9, %v1298_v46  ;;  %v1125_v51 = vpop.f32.mrf.mxu2  ;;  %v942_v52 = vpop.f32.mrf.mxu0 }
  0xca   : > { %v1031_v53 = vpop.f32.mrf.mxu1 }
  0xcb   : > { %vm1366_vm3 = vcmp.gt.f32.partialorder %v1334_v50, 0.0  ;;  %v1398_v55 = vmul.f32 0.1, %v1334_v50  ;;  %v1032_v57 = vadd.f32 %v1031_v53, %v942_v52 }
  0xcd   : > { %v1430_v58 = vsel %vm1366_vm3, %v1334_v50, %v1398_v55  ;;  %v1121_v59 = vadd.f32 %v1120_v15, %v1032_v57  ;;  %v1890_v55 = vld [vmem:[%s2361_s12 + $0x140] sm:$0xf] }
  0xce   : > { %v1494_v62 = vadd.f32 %v1462_v56, %v1430_v58  ;;  %1999 = vmatmul.msk.bf16.gmra.mxu2 %vm877_vm0, %v1867_v54  ;;  %v2050_v56 = vld [vmem:[%s2361_s12 + $0x148] sm:$0xf0] }
  0xcf   : > { %v1299_v1 = vmul.f32 %v2483_v7, %v1121_v59  ;;  %v2537_v2 = vpop.f32.mrf.mxu3  ;;  %v1891_v61 = vor.u32 %v2050_v56, %v1890_v55 }
  0xd0   : > { %1526 = vst [vmem:[%s2517_s17 + $0x10] sm:$0xff] %v1494_v62 }
  0xd1   : > { %v1335_v4 = vadd.f32 %v2490_v9, %v1299_v1  ;;  %v1128_v5 = vpop.f32.mrf.mxu2  ;;  %v945_v6 = vpop.f32.mrf.mxu0 }
  0xd2   : > { %v1034_v10 = vpop.f32.mrf.mxu1 }
  0xd3   : > { %vm1367_vm4 = vcmp.gt.f32.partialorder %v1335_v4, 0.0  ;;  %v1399_v12 = vmul.f32 0.1, %v1335_v4  ;;  %v1035_v14 = vadd.f32 %v1034_v10, %v945_v6 }
  0xd4   : > { %984 = vmatmul.bf16.gmra.mxu0 %v1847_v3 }
  0xd5   : > { %v1431_v15 = vsel %vm1367_vm4, %v1335_v4, %v1399_v12  ;;  %v1124_v16 = vadd.f32 %v1123_v36, %v1035_v14  ;;  %1073 = vmatmul.bf16.gmra.mxu1 %v1851_v8  ;;  %v2042_v36 = vld [vmem:[%s2361_s12 + $0x10c] sm:$0xf]  ;;  %s2075_s12 = sshll.u32 %s2224_s21, 8  ;;  %s1557_s21 = scalar_lea.sflag [#allocation4], %s320_s11 }
  0xd6   : > { %v1495_v17 = vadd.f32 %v1463_v13, %v1431_v15  ;;  %v1863_v44 = vor.u32 %v2042_v36, %v1860_v37  ;;  %v1467_v15 = vld [vmem:[%s2501_s13 + $0x38] sm:$0xff]  ;;  %s1569_s27 = scalar_lea.hbm %s2743_s5, %s2075_s12 }
  0xd7   : > { %v1300_v18 = vmul.f32 %v2483_v7, %v1124_v16  ;;  %v2543_v19 = vpop.f32.mrf.mxu3  ;;  %s1572_s7 = sshll.u32 %s1569_s27, 4  ;;  %s1573_s7 = int_to_ptr.hbm [resolvable:$true] %s1572_s7 }
  0xd8   : > { %1527 = vst [vmem:[%s2517_s17 + $0x18] sm:$0xff] %v1495_v17  ;;  %s2168_s8 = sshra.s32 %s1573_s7, 4  ;;  %s2169_s8 = int_to_ptr.hbm [resolvable:$true] %s2168_s8 }
  0xd9   : > { %v1336_v22 = vadd.f32 %v2490_v9, %v1300_v18  ;;  %v1130_v23 = vpop.f32.mrf.mxu2  ;;  %v947_v24 = vpop.f32.mrf.mxu0  ;;  %s2170_s9 = scalar_lea.hbm %s2169_s8, 256  ;;  %p2175_p1 = scmp.lt.s32.totalorder %s2169_s8, %s2743_s5 }
  0xda   : > { %v1036_v25 = vpop.f32.mrf.mxu1  ;;  %p2171_p12 = scmp.ne.s32.totalorder %s2169_s8, %s2170_s9  ;;  %p2176_p2 = scmp.lt.s32.totalorder %s2174_s15, %s2170_s9 }
  0xdb   : > { %vm1368_vm5 = vcmp.gt.f32.partialorder %v1336_v22, 0.0  ;;  %v1400_v27 = vmul.f32 0.1, %v1336_v22  ;;  %v1037_v29 = vadd.f32 %v1036_v25, %v947_v24 }
  0xdc   : > { %p2172_p13 = pnand %p2171_p12, %p2306_p4  ;;  %p2177_p3 = por %p2176_p2, %p2175_p1 }
  0xdd   : > { %v1432_v30 = vsel %vm1368_vm5, %v1336_v22, %v1400_v27  ;;  %v1126_v31 = vadd.f32 %v1125_v51, %v1037_v29  ;;  %v1468_v29 = vld [vmem:[%s2501_s13 + $0x40] sm:$0xff] }
  0xde   : > { %v1496_v35 = vadd.f32 %v1464_v28, %v1432_v30  ;;  %2000 = vmatmul.msk.bf16.gmra.mxu2 %vm877_vm0, %v1879_v26  ;;  %p2173_p0 = pneg %p2172_p13 }
  0xdf   : > { %v1301_v38 = vmul.f32 %v2483_v7, %v1126_v31  ;;  %v2556_v39 = vpop.f32.mrf.mxu3 }
  0xe0   : > { %1528 = vst [vmem:[%s2517_s17 + $0x20] sm:$0xff] %v1496_v35  ;;  %p2178_p5 = pnand %p2177_p3, %p2173_p0 }
  0xe1   : > { %v1337_v41 = vadd.f32 %v2490_v9, %v1301_v38  ;;  %v1133_v42 = vpop.f32.mrf.mxu2  ;;  %v950_v43 = vpop.f32.mrf.mxu0 }
  0xe2   : > { %v1039_v45 = vpop.f32.mrf.mxu1 }
  0xe3   : > { %vm1369_vm6 = vcmp.gt.f32.partialorder %v1337_v41, 0.0  ;;  %v1401_v46 = vmul.f32 0.1, %v1337_v41  ;;  %v1040_v49 = vadd.f32 %v1039_v45, %v950_v43  ;;  %v1469_v43 = vld [vmem:[%s2501_s13 + $0x48] sm:$0xff] }
  0xe4   : > { %989 = vmatmul.bf16.gmra.mxu0 %v1859_v40 }
  0xe5   : > { %v1433_v50 = vsel %vm1369_vm6, %v1337_v41, %v1401_v46  ;;  %v1129_v51 = vadd.f32 %v1128_v5, %v1040_v49  ;;  %1078 = vmatmul.bf16.gmra.mxu1 %v1863_v44 }
  0xe6   : > { %v1497_v52 = vadd.f32 %v1465_v48, %v1433_v50 }
  0xe7   : > { %v1302_v53 = vmul.f32 %v2483_v7, %v1129_v51  ;;  %v2562_v54 = vpop.f32.mrf.mxu3 }
  0xe8   : > { %1529 = vst [vmem:[%s2517_s17 + $0x28] sm:$0xff] %v1497_v52 }
  0xe9   : > { %v1338_v57 = vadd.f32 %v2490_v9, %v1302_v53  ;;  %v1135_v58 = vpop.f32.mrf.mxu2  ;;  %v952_v59 = vpop.f32.mrf.mxu0 }
  0xea   : > { %v1041_v60 = vpop.f32.mrf.mxu1 }
  0xeb   : > { %vm1370_vm7 = vcmp.gt.f32.partialorder %v1338_v57, 0.0  ;;  %v1402_v62 = vmul.f32 0.1, %v1338_v57  ;;  %v1042_v0 = vadd.f32 %v1041_v60, %v952_v59 }
  0xed   : > { %v1434_v1 = vsel %vm1370_vm7, %v1338_v57, %v1402_v62  ;;  %v1131_v3 = vadd.f32 %v1130_v23, %v1042_v0  ;;  %v1470_v57 = vld [vmem:[%s2501_s13 + $0x50] sm:$0xff] }
  0xee   : > { %v1498_v4 = vadd.f32 %v1466_v63, %v1434_v1  ;;  %2001 = vmatmul.msk.bf16.gmra.mxu2 %vm877_vm0, %v1891_v61 }
  0xef   : > { %v1303_v5 = vmul.f32 %v2483_v7, %v1131_v3  ;;  %v2571_v6 = vpop.f32.mrf.mxu3 }
  0xf0   : > { %1530 = vst [vmem:[%s2517_s17 + $0x30] sm:$0xff] %v1498_v4 }
  0xf1   : > { %v1339_v8 = vadd.f32 %v2490_v9, %v1303_v5  ;;  %v1138_v10 = vpop.f32.mrf.mxu2  ;;  %v955_v12 = vpop.f32.mrf.mxu0 }
  0xf2   : > { %v1044_v13 = vpop.f32.mrf.mxu1 }
  0xf3   : > { %vm1371_vm8 = vcmp.gt.f32.partialorder %v1339_v8, 0.0  ;;  %v1403_v14 = vmul.f32 0.1, %v1339_v8  ;;  %v1045_v16 = vadd.f32 %v1044_v13, %v955_v12 }
  0xf5   : > { %v1435_v17 = vsel %vm1371_vm8, %v1339_v8, %v1403_v14  ;;  %v1134_v18 = vadd.f32 %v1133_v42, %v1045_v16  ;;  %v1471_v8 = vld [vmem:[%s2501_s13 + $0x58] sm:$0xff] }
  0xf6   : > { %v1499_v20 = vadd.f32 %v1467_v15, %v1435_v17 }
  0xf7   : > { %v1304_v21 = vmul.f32 %v2483_v7, %v1134_v18  ;;  %v1084_v22 = vpop.f32.mrf.mxu3 }
  0xf8   : > { %1531 = vst [vmem:[%s2517_s17 + $0x38] sm:$0xff] %v1499_v20  ;;  %v2579_v23 = vadd.f32 %v1084_v22, %v2494_v11  ;;  %v1472_v22 = vld [vmem:[%s2501_s13 + $0x60] sm:$0xff] }
  0xf9   : > { %v1340_v24 = vadd.f32 %v2490_v9, %v1304_v21  ;;  %v1140_v25 = vpop.f32.mrf.mxu2  ;;  %v957_v26 = vpop.f32.mrf.mxu0 }
  0xfa   : > { %v1046_v27 = vpop.f32.mrf.mxu1 }
  0xfb   : > { %vm1372_vm9 = vcmp.gt.f32.partialorder %v1340_v24, 0.0  ;;  %v1404_v28 = vmul.f32 0.1, %v1340_v24  ;;  %v1047_v30 = vadd.f32 %v1046_v27, %v957_v26 }
  0xfd   : > { %v1436_v31 = vsel %vm1372_vm9, %v1340_v24, %v1404_v28  ;;  %v1136_v33 = vadd.f32 %v1135_v58, %v1047_v30 }
  0xfe   : > { %v1500_v34 = vadd.f32 %v1468_v29, %v1436_v31 }
  0xff   : > { %v1305_v35 = vmul.f32 %v2483_v7, %v1136_v33  ;;  %v1086_v36 = vpop.f32.mrf.mxu3 }
 0x100   : > { %1532 = vst [vmem:[%s2517_s17 + $0x40] sm:$0xff] %v1500_v34  ;;  %v2586_v11 = vadd.f32 %v1086_v36, %v2515_v32  ;;  %v1473_v36 = vld [vmem:[%s2501_s13 + $0x68] sm:$0xff] }
 0x101   : > { %v1341_v37 = vadd.f32 %v2490_v9, %v1305_v35  ;;  %v1143_v38 = vpop.f32.mrf.mxu2  ;;  %v960_v40 = vpop.f32.mrf.mxu0 }
 0x102   : > { %v1049_v41 = vpop.f32.mrf.mxu1 }
 0x103   : > { %vm1373_vm10 = vcmp.gt.f32.partialorder %v1341_v37, 0.0  ;;  %v1405_v42 = vmul.f32 0.1, %v1341_v37  ;;  %v1050_v44 = vadd.f32 %v1049_v41, %v960_v40 }
 0x105   : > { %v1437_v45 = vsel %vm1373_vm10, %v1341_v37, %v1405_v42  ;;  %v1139_v46 = vadd.f32 %v1138_v10, %v1050_v44 }
 0x106   : > { %v1501_v48 = vadd.f32 %v1469_v43, %v1437_v45 }
 0x107   : > { %v1306_v49 = vmul.f32 %v2483_v7, %v1139_v46  ;;  %v1089_v50 = vpop.f32.mrf.mxu3 }
 0x108   : > { %1533 = vst [vmem:[%s2517_s17 + $0x48] sm:$0xff] %v1501_v48  ;;  %v2593_v32 = vadd.f32 %v1089_v50, %v2524_v47  ;;  %v1474_v50 = vld [vmem:[%s2501_s13 + $0x70] sm:$0xff] }
 0x109   : > { %v1342_v51 = vadd.f32 %v2490_v9, %v1306_v49  ;;  %v1145_v52 = vpop.f32.mrf.mxu2  ;;  %v962_v53 = vpop.f32.mrf.mxu0 }
 0x10a   : > { %v1051_v55 = vpop.f32.mrf.mxu1 }
 0x10b   : > { %vm1374_vm11 = vcmp.gt.f32.partialorder %v1342_v51, 0.0  ;;  %v1406_v56 = vmul.f32 0.1, %v1342_v51  ;;  %v1052_v58 = vadd.f32 %v1051_v55, %v962_v53 }
 0x10d   : > { %v1438_v59 = vsel %vm1374_vm11, %v1342_v51, %v1406_v56  ;;  %v1141_v60 = vadd.f32 %v1140_v25, %v1052_v58 }
 0x10e   : > { %v1502_v61 = vadd.f32 %v1470_v57, %v1438_v59 }
 0x10f   : > { %v1307_v62 = vmul.f32 %v2483_v7, %v1141_v60  ;;  %v1091_v63 = vpop.f32.mrf.mxu3 }
 0x110   : > { %1534 = vst [vmem:[%s2517_s17 + $0x50] sm:$0xff] %v1502_v61  ;;  %v2600_v47 = vadd.f32 %v1091_v63, %v2537_v2  ;;  %v1475_v63 = vld [vmem:[%s2501_s13 + $0x78] sm:$0xff] }
 0x111   : > { %v1343_v0 = vadd.f32 %v2490_v9, %v1307_v62  ;;  %v1148_v1 = vpop.f32.mrf.mxu2  ;;  %v965_v3 = vpop.f32.mrf.mxu0 }
 0x112   : > { %v1054_v4 = vpop.f32.mrf.mxu1 }
 0x113   : > { %vm1375_vm12 = vcmp.gt.f32.partialorder %v1343_v0, 0.0  ;;  %v1407_v5 = vmul.f32 0.1, %v1343_v0  ;;  %v1055_v10 = vadd.f32 %v1054_v4, %v965_v3 }
 0x115   : > { %v1439_v12 = vsel %vm1375_vm12, %v1343_v0, %v1407_v5  ;;  %v1144_v13 = vadd.f32 %v1143_v38, %v1055_v10 }
 0x116   : > { %v1503_v14 = vadd.f32 %v1471_v8, %v1439_v12 }
 0x117   : > { %v1308_v15 = vmul.f32 %v2483_v7, %v1144_v13  ;;  %v1094_v16 = vpop.f32.mrf.mxu3 }
 0x118   : > { %1535 = vst [vmem:[%s2517_s17 + $0x58] sm:$0xff] %v1503_v14  ;;  %v1095_v4 = vadd.f32 %v1094_v16, %v2543_v19 }
 0x119   : > { %v1344_v2 = vadd.f32 %v2490_v9, %v1308_v15  ;;  %v1150_v17 = vpop.f32.mrf.mxu2  ;;  %v967_v18 = vpop.f32.mrf.mxu0 }
 0x11a   : > { %v1056_v20 = vpop.f32.mrf.mxu1 }
 0x11b   : > { %vm1376_vm13 = vcmp.gt.f32.partialorder %v1344_v2, 0.0  ;;  %v1408_v21 = vmul.f32 0.1, %v1344_v2  ;;  %v1057_v24 = vadd.f32 %v1056_v20, %v967_v18  ;;  %v1476_v20 = vld [vmem:[%s2501_s13 + $0x80] sm:$0xff] }
 0x11d   : > { %v1440_v25 = vsel %vm1376_vm13, %v1344_v2, %v1408_v21  ;;  %v1146_v26 = vadd.f32 %v1145_v52, %v1057_v24 }
 0x11e   : > { %v1504_v27 = vadd.f32 %v1472_v22, %v1440_v25 }
 0x11f   : > { %v1309_v28 = vmul.f32 %v2483_v7, %v1146_v26  ;;  %v1096_v29 = vpop.f32.mrf.mxu3 }
 0x120   : > { %1536 = vst [vmem:[%s2517_s17 + $0x60] sm:$0xff] %v1504_v27  ;;  %v1097_v24 = vadd.f32 %v1096_v29, %v2556_v39  ;;  %v1488_v27 = vld [vmem:[%s2501_s13 + $0xe0] sm:$0xff] }
 0x121   : > { %v1345_v30 = vadd.f32 %v2490_v9, %v1309_v28  ;;  %v1153_v31 = vpop.f32.mrf.mxu2  ;;  %v970_v33 = vpop.f32.mrf.mxu0 }
 0x122   : > { %v1059_v34 = vpop.f32.mrf.mxu1 }
 0x123   : > { %vm1377_vm14 = vcmp.gt.f32.partialorder %v1345_v30, 0.0  ;;  %v1409_v35 = vmul.f32 0.1, %v1345_v30  ;;  %v1060_v37 = vadd.f32 %v1059_v34, %v970_v33 }
 0x125   : > { %v1441_v38 = vsel %vm1377_vm14, %v1345_v30, %v1409_v35  ;;  %v1149_v40 = vadd.f32 %v1148_v1, %v1060_v37 }
 0x126   : > { %v1505_v41 = vadd.f32 %v1473_v36, %v1441_v38 }
 0x127   : > { %v1310_v42 = vmul.f32 %v2483_v7, %v1149_v40  ;;  %v2613_v43 = vpop.f32.mrf.mxu3  ;;  %v1477_v40 = vld [vmem:[%s2501_s13 + $0x88] sm:$0xff] }
 0x128   : > { %1537 = vst [vmem:[%s2517_s17 + $0x68] sm:$0xff] %v1505_v41 }
 0x129   : > { %v1346_v44 = vadd.f32 %v2490_v9, %v1310_v42  ;;  %v1155_v45 = vpop.f32.mrf.mxu2  ;;  %v972_v46 = vpop.f32.mrf.mxu0 }
 0x12a   : > { %v1061_v48 = vpop.f32.mrf.mxu1 }
 0x12b   : > { %vm1378_vm15 = vcmp.gt.f32.partialorder %v1346_v44, 0.0  ;;  %v1410_v49 = vmul.f32 0.1, %v1346_v44  ;;  %v1062_v51 = vadd.f32 %v1061_v48, %v972_v46  ;;  %v1100_v46 = vadd.f32 %v2613_v43, %v2562_v54 }
 0x12d   : > { %v1442_v52 = vsel %vm1378_vm15, %v1346_v44, %v1410_v49  ;;  %v1151_v53 = vadd.f32 %v1150_v17, %v1062_v51 }
 0x12e   : > { %v1506_v55 = vadd.f32 %v1474_v50, %v1442_v52  ;;  %v1489_v50 = vld [vmem:[%s2501_s13 + $0xe8] sm:$0xff] }
 0x12f   : > { %v1311_v56 = vmul.f32 %v2483_v7, %v1151_v53  ;;  %v2619_v57 = vpop.f32.mrf.mxu3 }
 0x130   : > { %1538 = vst [vmem:[%s2517_s17 + $0x70] sm:$0xff] %v1506_v55 }
 0x131   : > { %v1347_v58 = vadd.f32 %v2490_v9, %v1311_v56  ;;  %v1158_v59 = vpop.f32.mrf.mxu2  ;;  %v975_v60 = vpop.f32.mrf.mxu0 }
 0x132   : > { %v1064_v61 = vpop.f32.mrf.mxu1 }
 0x133   : > { %vm1379_vm0 = vcmp.gt.f32.partialorder %v1347_v58, 0.0  ;;  %v1411_v62 = vmul.f32 0.1, %v1347_v58  ;;  %v1065_v0 = vadd.f32 %v1064_v61, %v975_v60 }
 0x135   : > { %v1443_v1 = vsel %vm1379_vm0, %v1347_v58, %v1411_v62  ;;  %v1154_v3 = vadd.f32 %v1153_v31, %v1065_v0  ;;  %v1478_v62 = vld [vmem:[%s2501_s13 + $0x90] sm:$0xff] }
 0x136   : > { %v1507_v5 = vadd.f32 %v1475_v63, %v1443_v1 }
 0x137   : > { %v1312_v8 = vmul.f32 %v2483_v7, %v1154_v3  ;;  %v1183_v10 = vpop.f32.mrf.mxu3 }
 0x138   : > { %1539 = vst [vmem:[%s2517_s17 + $0x78] sm:$0xff] %v1507_v5  ;;  %v1184_v12 = vadd.f32 %v1183_v10, %v1095_v4  ;;  %v1102_v4 = vadd.f32 %v2619_v57, %v2571_v6  ;;  %v1490_v10 = vld [vmem:[%s2501_s13 + $0xf0] sm:$0xff] }
 0x139   : > { %v1348_v13 = vadd.f32 %v2490_v9, %v1312_v8  ;;  %v1160_v14 = vpop.f32.mrf.mxu2  ;;  %v977_v15 = vpop.f32.mrf.mxu0 }
 0x13a   : > { %v1324_v2 = vmul.f32 %v2483_v7, %v1184_v12  ;;  %v1066_v17 = vpop.f32.mrf.mxu1 }
 0x13b   : > { %vm1380_vm1 = vcmp.gt.f32.partialorder %v1348_v13, 0.0  ;;  %v1412_v18 = vmul.f32 0.1, %v1348_v13  ;;  %v1067_v21 = vadd.f32 %v1066_v17, %v977_v15 }
 0x13c   : > { %v1360_v19 = vadd.f32 %v2490_v9, %v1324_v2 }
 0x13d   : > { %v1444_v16 = vsel %vm1380_vm1, %v1348_v13, %v1412_v18  ;;  %v1156_v22 = vadd.f32 %v1155_v45, %v1067_v21 }
 0x13e   : > { %v1508_v25 = vadd.f32 %v1476_v20, %v1444_v16  ;;  %vm1392_vm2 = vcmp.gt.f32.partialorder %v1360_v19, 0.0  ;;  %v1424_v26 = vmul.f32 0.1, %v1360_v19 }
 0x13f   : > { %v1313_v28 = vmul.f32 %v2483_v7, %v1156_v22  ;;  %v1185_v30 = vpop.f32.mrf.mxu3 }
 0x140   : > { %1540 = vst [vmem:[%s2517_s17 + $0x80] sm:$0xff] %v1508_v25  ;;  %v1456_v31 = vsel %vm1392_vm2, %v1360_v19, %v1424_v26  ;;  %v1186_v33 = vadd.f32 %v1185_v30, %v1097_v24  ;;  %v1479_v19 = vld [vmem:[%s2501_s13 + $0x98] sm:$0xff] }
 0x141   : > { %v1520_v34 = vadd.f32 %v1488_v27, %v1456_v31  ;;  %v1349_v35 = vadd.f32 %v2490_v9, %v1313_v28  ;;  %v1163_v36 = vpop.f32.mrf.mxu2  ;;  %v980_v37 = vpop.f32.mrf.mxu0  ;;  %v1491_v28 = vld [vmem:[%s2501_s13 + $0xf8] sm:$0xff] }
 0x142   : > { %v1325_v39 = vmul.f32 %v2483_v7, %v1186_v33  ;;  %v1069_v29 = vpop.f32.mrf.mxu1 }
 0x143   : > { %1552 = vst [vmem:[%s2517_s17 + $0xe0] sm:$0xff] %v1520_v34  ;;  %vm1381_vm3 = vcmp.gt.f32.partialorder %v1349_v35, 0.0  ;;  %v1413_v38 = vmul.f32 0.1, %v1349_v35  ;;  %v1070_v41 = vadd.f32 %v1069_v29, %v980_v37  ;;  %v1480_v29 = vld [vmem:[%s2501_s13 + $0xa0] sm:$0xff] }
 0x144   : > { %v1361_v42 = vadd.f32 %v2490_v9, %v1325_v39 }
 0x145   : > { %v1445_v44 = vsel %vm1381_vm3, %v1349_v35, %v1413_v38  ;;  %v1159_v45 = vadd.f32 %v1158_v59, %v1070_v41 }
 0x146   : > { %v1509_v48 = vadd.f32 %v1477_v40, %v1445_v44  ;;  %vm1393_vm4 = vcmp.gt.f32.partialorder %v1361_v42, 0.0  ;;  %v1425_v49 = vmul.f32 0.1, %v1361_v42 }
 0x147   : > { %v1314_v51 = vmul.f32 %v2483_v7, %v1159_v45  ;;  %v1188_v52 = vpop.f32.mrf.mxu3 }
 0x148   : > { %1541 = vst [vmem:[%s2517_s17 + $0x88] sm:$0xff] %v1509_v48  ;;  %v1457_v53 = vsel %vm1393_vm4, %v1361_v42, %v1425_v49  ;;  %v1189_v55 = vadd.f32 %v1188_v52, %v1100_v46  ;;  %v1481_v52 = vld [vmem:[%s2501_s13 + $0xa8] sm:$0xff] }
 0x149   : > { %v1521_v56 = vadd.f32 %v1489_v50, %v1457_v53  ;;  %v1350_v58 = vadd.f32 %v2490_v9, %v1314_v51  ;;  %v1165_v60 = vpop.f32.mrf.mxu2  ;;  %v982_v59 = vpop.f32.mrf.mxu0 }
 0x14a   : > { %v1326_v54 = vmul.f32 %v2483_v7, %v1189_v55  ;;  %v1071_v43 = vpop.f32.mrf.mxu1 }
 0x14b   : > { %1553 = vst [vmem:[%s2517_s17 + $0xe8] sm:$0xff] %v1521_v56  ;;  %vm1382_vm5 = vcmp.gt.f32.partialorder %v1350_v58, 0.0  ;;  %v1414_v61 = vmul.f32 0.1, %v1350_v58  ;;  %v1072_v63 = vadd.f32 %v1071_v43, %v982_v59 }
 0x14c   : > { %v1362_v0 = vadd.f32 %v2490_v9, %v1326_v54 }
 0x14d   : > { %v1446_v1 = vsel %vm1382_vm5, %v1350_v58, %v1414_v61  ;;  %v1161_v3 = vadd.f32 %v1160_v14, %v1072_v63 }
 0x14e   : > { %v1510_v5 = vadd.f32 %v1478_v62, %v1446_v1  ;;  %vm1394_vm6 = vcmp.gt.f32.partialorder %v1362_v0, 0.0  ;;  %v1426_v8 = vmul.f32 0.1, %v1362_v0 }
 0x14f   : > { %v1315_v12 = vmul.f32 %v2483_v7, %v1161_v3  ;;  %v1190_v13 = vpop.f32.mrf.mxu3 }
 0x150   : > { %1542 = vst [vmem:[%s2517_s17 + $0x90] sm:$0xff] %v1510_v5  ;;  %v1458_v15 = vsel %vm1394_vm6, %v1362_v0, %v1426_v8  ;;  %v1191_v2 = vadd.f32 %v1190_v13, %v1102_v4  ;;  %v1482_v8 = vld [vmem:[%s2501_s13 + $0xb0] sm:$0xff] }
 0x151   : > { %v1522_v17 = vadd.f32 %v1490_v10, %v1458_v15  ;;  %v1351_v18 = vadd.f32 %v2490_v9, %v1315_v12  ;;  %v1168_v14 = vpop.f32.mrf.mxu2  ;;  %v985_v20 = vpop.f32.mrf.mxu0 }
 0x152   : > { %v1327_v6 = vmul.f32 %v2483_v7, %v1191_v2  ;;  %v1074_v57 = vpop.f32.mrf.mxu1 }
 0x153   : > { %1554 = vst [vmem:[%s2517_s17 + $0xf0] sm:$0xff] %v1522_v17  ;;  %vm1383_vm7 = vcmp.gt.f32.partialorder %v1351_v18, 0.0  ;;  %v1415_v21 = vmul.f32 0.1, %v1351_v18  ;;  %v1075_v16 = vadd.f32 %v1074_v57, %v985_v20 }
 0x154   : > { %v1363_v22 = vadd.f32 %v2490_v9, %v1327_v6 }
 0x155   : > { %v1447_v24 = vsel %vm1383_vm7, %v1351_v18, %v1415_v21  ;;  %v1164_v25 = vadd.f32 %v1163_v36, %v1075_v16 }
 0x156   : > { %v1511_v26 = vadd.f32 %v1479_v19, %v1447_v24  ;;  %vm1395_vm8 = vcmp.gt.f32.partialorder %v1363_v22, 0.0  ;;  %v1427_v27 = vmul.f32 0.1, %v1363_v22 }
 0x157   : > { %v1316_v30 = vmul.f32 %v2483_v7, %v1164_v25 }
 0x158   : > { %1543 = vst [vmem:[%s2517_s17 + $0x98] sm:$0xff] %v1511_v26  ;;  %v1459_v31 = vsel %vm1395_vm8, %v1363_v22, %v1427_v27  ;;  %v1483_v22 = vld [vmem:[%s2501_s13 + $0xb8] sm:$0xff] }
 0x159   : > { %v1523_v33 = vadd.f32 %v1491_v28, %v1459_v31  ;;  %v1352_v34 = vadd.f32 %v2490_v9, %v1316_v30  ;;  %v1170_v35 = vpop.f32.mrf.mxu2  ;;  %v987_v37 = vpop.f32.mrf.mxu0  ;;  %v1486_v30 = vld [vmem:[%s2501_s13 + $0xd0] sm:$0xff] }
 0x15a   : > { %v1076_v39 = vpop.f32.mrf.mxu1 }
 0x15b   : > { %1555 = vst [vmem:[%s2517_s17 + $0xf8] sm:$0xff] %v1523_v33  ;;  %vm1384_vm9 = vcmp.gt.f32.partialorder %v1352_v34, 0.0  ;;  %v1416_v36 = vmul.f32 0.1, %v1352_v34  ;;  %v1077_v38 = vadd.f32 %v1076_v39, %v987_v37 }
 0x15d   : > { %v1448_v40 = vsel %vm1384_vm9, %v1352_v34, %v1416_v36  ;;  %v1166_v41 = vadd.f32 %v1165_v60, %v1077_v38  ;;  %v1487_v36 = vld [vmem:[%s2501_s13 + $0xd8] sm:$0xff] }
 0x15e   : > { %v1512_v42 = vadd.f32 %v1480_v29, %v1448_v40 }
 0x15f   : > { %v1317_v44 = vmul.f32 %v2483_v7, %v1166_v41 }
 0x160   : > { %1544 = vst [vmem:[%s2517_s17 + $0xa0] sm:$0xff] %v1512_v42 }
 0x161   : > { %v1353_v45 = vadd.f32 %v2490_v9, %v1317_v44  ;;  %v1173_v46 = vpop.f32.mrf.mxu2  ;;  %v990_v48 = vpop.f32.mrf.mxu0 }
 0x162   : > { %v1174_v49 = vadd.f32 %v1173_v46, %v2579_v23  ;;  %v1079_v50 = vpop.f32.mrf.mxu1  ;;  %v1484_v23 = vld [vmem:[%s2501_s13 + $0xc0] sm:$0xff] }
 0x163   : > { %vm1385_vm10 = vcmp.gt.f32.partialorder %v1353_v45, 0.0  ;;  %v1417_v51 = vmul.f32 0.1, %v1353_v45  ;;  %v1080_v53 = vadd.f32 %v1079_v50, %v990_v48 }
 0x164   : > { %v1320_v55 = vmul.f32 %v2483_v7, %v1174_v49 }
 0x165   : > { %v1449_v56 = vsel %vm1385_vm10, %v1353_v45, %v1417_v51  ;;  %v1169_v58 = vadd.f32 %v1168_v14, %v1080_v53  ;;  %v1485_v14 = vld [vmem:[%s2501_s13 + $0xc8] sm:$0xff] }
 0x166   : > { %v1513_v60 = vadd.f32 %v1481_v52, %v1449_v56  ;;  %v1356_v59 = vadd.f32 %v2490_v9, %v1320_v55 }
 0x167   : > { %v1318_v54 = vmul.f32 %v2483_v7, %v1169_v58 }
 0x168   : > { %1545 = vst [vmem:[%s2517_s17 + $0xa8] sm:$0xff] %v1513_v60  ;;  %vm1388_vm11 = vcmp.gt.f32.partialorder %v1356_v59, 0.0  ;;  %v1420_v43 = vmul.f32 0.1, %v1356_v59 }
 0x169   : > { %v1354_v61 = vadd.f32 %v2490_v9, %v1318_v54  ;;  %v1175_v62 = vpop.f32.mrf.mxu2  ;;  %v992_v63 = vpop.f32.mrf.mxu0 }
 0x16a   : > { %v1452_v0 = vsel %vm1388_vm11, %v1356_v59, %v1420_v43  ;;  %v1176_v1 = vadd.f32 %v1175_v62, %v2586_v11  ;;  %v1081_v3 = vpop.f32.mrf.mxu1 }
 0x16b   : > { %v1516_v4 = vadd.f32 %v1484_v23, %v1452_v0  ;;  %vm1386_vm12 = vcmp.gt.f32.partialorder %v1354_v61, 0.0  ;;  %v1418_v5 = vmul.f32 0.1, %v1354_v61  ;;  %v1082_v10 = vadd.f32 %v1081_v3, %v992_v63 }
 0x16c   : > { %v1321_v12 = vmul.f32 %v2483_v7, %v1176_v1 }
 0x16d   : > { %1548 = vst [vmem:[%s2517_s17 + $0xc0] sm:$0xff] %v1516_v4  ;;  %v1450_v13 = vsel %vm1386_vm12, %v1354_v61, %v1418_v5  ;;  %v1171_v15 = vadd.f32 %v1170_v35, %v1082_v10 }
 0x16e   : > { %v1514_v2 = vadd.f32 %v1482_v8, %v1450_v13  ;;  %v1357_v17 = vadd.f32 %v2490_v9, %v1321_v12 }
 0x16f   : > { %v1319_v18 = vmul.f32 %v2483_v7, %v1171_v15 }
 0x170   : > { %1546 = vst [vmem:[%s2517_s17 + $0xb0] sm:$0xff] %v1514_v2  ;;  %vm1389_vm13 = vcmp.gt.f32.partialorder %v1357_v17, 0.0  ;;  %v1421_v11 = vmul.f32 0.1, %v1357_v17 }
 0x171   : > { %v1355_v20 = vadd.f32 %v2490_v9, %v1319_v18  ;;  %v1178_v6 = vpop.f32.mrf.mxu2 }
 0x172   : > { %v1453_v57 = vsel %vm1389_vm13, %v1357_v17, %v1421_v11  ;;  %v1179_v21 = vadd.f32 %v1178_v6, %v2593_v32 }
 0x173   : > { %v1517_v19 = vadd.f32 %v1485_v14, %v1453_v57  ;;  %vm1387_vm14 = vcmp.gt.f32.partialorder %v1355_v20, 0.0  ;;  %v1419_v16 = vmul.f32 0.1, %v1355_v20 }
 0x174   : > { %v1322_v24 = vmul.f32 %v2483_v7, %v1179_v21 }
 0x175   : > { %1549 = vst [vmem:[%s2517_s17 + $0xc8] sm:$0xff] %v1517_v19  ;;  %v1451_v25 = vsel %vm1387_vm14, %v1355_v20, %v1419_v16 }
 0x176   : > { %v1515_v26 = vadd.f32 %v1483_v22, %v1451_v25  ;;  %v1358_v27 = vadd.f32 %v2490_v9, %v1322_v24 }
 0x178   : > { %1547 = vst [vmem:[%s2517_s17 + $0xb8] sm:$0xff] %v1515_v26  ;;  %vm1390_vm15 = vcmp.gt.f32.partialorder %v1358_v27, 0.0  ;;  %v1422_v28 = vmul.f32 0.1, %v1358_v27 }
 0x179   : > { %v1180_v31 = vpop.f32.mrf.mxu2 }
 0x17a   : > { %v1454_v32 = vsel %vm1390_vm15, %v1358_v27, %v1422_v28  ;;  %v1181_v33 = vadd.f32 %v1180_v31, %v2600_v47 }
 0x17b   : > { %v1518_v34 = vadd.f32 %v1486_v30, %v1454_v32 }
 0x17c   : > { %v1323_v35 = vmul.f32 %v2483_v7, %v1181_v33 }
 0x17d   : > { %1550 = vst [vmem:[%s2517_s17 + $0xd0] sm:$0xff] %v1518_v34 }
 0x17e   : > { %v1359_v37 = vadd.f32 %v2490_v9, %v1323_v35 }
 0x180   : > { %vm1391_vm0 = vcmp.gt.f32.partialorder %v1359_v37, 0.0  ;;  %v1423_v39 = vmul.f32 0.1, %v1359_v37 }
 0x182   : > { %v1455_v29 = vsel %vm1391_vm0, %v1359_v37, %v1423_v39 }
 0x183   : > { %v1519_v47 = vadd.f32 %v1487_v36, %v1455_v29 }
 0x185   : > { %1551 = vst [vmem:[%s2517_s17 + $0xd8] sm:$0xff] %v1519_v47 }
 0x186   : > { %2181 = shalt.err (!%p2178_p5)
}
 0x187   : > { %s2234_s11 = smov 128   ;;  %s2235_s17 = smov 8  }
 0x188   : > { %2095 = dma.vmem_to_hbm [thread:$0]  (%p2306_p4), %s1571_s29, 4096, %s1573_s7, %s1557_s21, %s2234_s11, %s2234_s11, %s2235_s17  }
 0x189 PF: > { %p2101_p6 = scmp.ge.s32.totalorder %s2232_s23, 2  ;;  %s1587_s12 = sand.u32 1, %s2212_s18  }
 0x18a   : > { %s1588_s24 = scalar_lea.sflag [#allocation4], %s1587_s12 }
 0x18b   : > { %p2098_p7 = pnand %p2101_p6, %p2313_p8 }
 0x18d   : > { %p2099_p9 = pneg %p2098_p7 }
 0x18f   : > { %2207 = dma.done.wait (%p2099_p9), %s1588_s24, 4096  }
 0x190   : > { %2209 = vsyncadd (%p2099_p9), %s1588_s24, 4294963200  ;;  %s18_s23 = sadd.s32 1, %s2232_s23   ;;  %s2746_s18 = smov %s2216_s19 }
 0x191   : > { %p15_p10 = scmp.ge.s32.totalorder %s18_s23, 4   ;;  %s2747_s19 = smov %s2220_s20 }
 0x192   : > { %s2748_s20 = smov %s2319_s6  ;;  %s2749_s21 = smov %s2228_s22 }
 0x193   : > { %s2750_s22 = smov %s2752_s26  ;;  %17 = sbr.rel (!%p15_p10) target bundleno = 4 (0x4), region = 95 }
 0x198   :  { %1594 = vsyncpa [#allocation4], 1 }
 0x199   :  { %1596 = vsyncpa [#allocation4 + $0x1], 1 }

</bundles_post_ra>
